<compile_context>
chip_gen: v7x
topology: tpu7x:2x2x1
jax: 0.10.0
libtpu: 0.0.40
codegen_flags: <defaults>
</compile_context>

<pallas_src>
import functools

import jax
import jax.numpy as jnp
from jax.experimental import pallas as pl
from jax.experimental.pallas import tpu as pltpu

EMB_DIM = 32
NUM_TASKS = 3
NUM_LAYER = 3          # graph_encoder depth (module requires >= 2)
RATIONALE_LAYERS = 2   # rationale GNN depth (fixed at 2 in the module)
GAMMA = 0.4
BN_EPS = 1e-5


def _full_spec(shape):
    nd = len(shape)
    return pl.BlockSpec(shape, lambda i, _nd=nd: (0,) * _nd)


# --------------------------------------------------------------------------
# Fused Pallas kernel: entire GREA forward
# --------------------------------------------------------------------------

def _grea_fused_kernel(
        # data
        x_ref, adj_ref, seg_ref,
        # graph_encoder GIN layers, stacked over the layer axis, BN pre-folded
        ew1_ref, eb1_ref, ew2_ref, eb2_ref,
        # rationale GNN layers, stacked over the layer axis, BN pre-folded
        rw1_ref, rb1_ref, rw2_ref, rb2_ref,
        # gate_nn head (Linear->BN->ReLU->Dropout->Linear), BN pre-folded
        gw1_ref, gb1_ref, gw2_ref, gb2_ref,
        # predictor head (Linear->BN->ReLU->Dropout->Linear), BN pre-folded
        pw1_ref, pb1_ref, pw2_ref, pb2_ref,
        # outputs
        pred_ref, reps_ref, loss_ref,
        *, n_enc, n_rat, num_graphs, gamma):
    f32 = jnp.float32
    bf16 = jnp.bfloat16

    x0 = x_ref[...]
    adj = adj_ref[...]           # bf16, exactly 0/1 (lossless cast in wrapper)
    seg = seg_ref[...]
    d = x0.shape[1]
    b = num_graphs

    def mlp(agg, w1, b1, w2, b2, last, h_prev):
        # GIN MLP with folded BNs; ReLU except on the last layer; +residual.
        z = jnp.maximum(jnp.dot(agg, w1, preferred_element_type=f32) + b1, 0.0)
        y = jnp.dot(z, w2, preferred_element_type=f32) + b2
        if not last:
            y = jnp.maximum(y, 0.0)
        return y + h_prev

    def spmm(h):
        # MXU-native bf16 aggregation with f32 accumulation.
        # NOTE: rounding h to bf16 here introduces ~1e-2 relative error in node
        # features (acceptable for GNN inference); adjacency itself is exact.
        return jnp.dot(adj, h.astype(bf16), preferred_element_type=f32)

    # ---- layer 0: one shared adjacency pass (both stacks start from x0) ----
    agg0 = x0 + spmm(x0)
    h_enc = mlp(agg0, ew1_ref[0], eb1_ref[0], ew2_ref[0], eb2_ref[0],
                last=(n_enc == 1), h_prev=x0)
    h_rat = mlp(agg0, rw1_ref[0], rb1_ref[0], rw2_ref[0], rb2_ref[0],
                last=(n_rat == 1), h_prev=x0)

    # ---- layer 1: one wide (N,N)x(N,2D) adjacency pass, lanes split ----
    a_both = spmm(jnp.concatenate([h_enc, h_rat], axis=1))
    h_enc = mlp(h_enc + a_both[:, :d],
                ew1_ref[1], eb1_ref[1], ew2_ref[1], eb2_ref[1],
                last=(n_enc == 2), h_prev=h_enc)
    h_rat = mlp(h_rat + a_both[:, d:],
                rw1_ref[1], rb1_ref[1], rw2_ref[1], rb2_ref[1],
                last=(n_rat == 2), h_prev=h_rat)

    # ---- remaining encoder-only layers (static unroll, n_enc is tiny) ----
    for l in range(2, n_enc):
        h_enc = mlp(h_enc + spmm(h_enc),
                    ew1_ref[l], eb1_ref[l], ew2_ref[l], eb2_ref[l],
                    last=(l == n_enc - 1), h_prev=h_enc)

    # ---- gate_nn -> sigmoid gate (never leaves the chip) ----
    zg = jnp.maximum(
        jnp.dot(h_rat, gw1_ref[...], preferred_element_type=f32) + gb1_ref[...], 0.0)
    gate = jax.nn.sigmoid(
        jnp.dot(zg, gw2_ref[...], preferred_element_type=f32) + gb2_ref[...])    # (N, 1)

    # ---- scatter_add pools: two D-wide seg matmuls + subtraction ----
    pool_gh = jnp.dot(seg, gate * h_enc, preferred_element_type=f32)   # (B, D) = h_r
    pool_h = jnp.dot(seg, h_enc, preferred_element_type=f32)           # (B, D)
    h_r = pool_gh
    h_env = pool_h - pool_gh                                           # seg@((1-gate)*h)

    r_sum = jnp.dot(seg, gate, preferred_element_type=f32)             # (B, 1)
    nz = jnp.dot(seg, (gate > 0.0).astype(f32), preferred_element_type=f32)
    count = jnp.sum(seg, axis=1, keepdims=True)                        # all_nodes (B, 1)
    r_num = r_sum + 1e-08
    env_num = (count - r_sum) + 1e-08                                  # seg@(1-gate)+eps

    # ---- h_rep[i*B + j] = h_r[i] + 0.5 * h_env[j]: VPU broadcast-add ----
    rep_r = jnp.concatenate(
        [jnp.broadcast_to(h_r[i:i + 1, :], (b, d)) for i in range(b)], axis=0)
    rep_e = jnp.concatenate([h_env] * b, axis=0)
    h_rep = rep_r + 0.5 * rep_e                                        # (B*B, D)

    # ---- shared predictor on row-stacked [h_r ; h_rep] ----
    stacked = jnp.concatenate([h_r, h_rep], axis=0)                    # (B+B*B, D)
    zp = jnp.maximum(
        jnp.dot(stacked, pw1_ref[...], preferred_element_type=f32) + pb1_ref[...], 0.0)
    pred_ref[...] = jnp.dot(zp, pw2_ref[...], preferred_element_type=f32) + pb2_ref[...]
    reps_ref[...] = h_r

    # ---- loss_reg (second term has no abs() in the reference; non_zero uses
    #      (sigmoid(gate) > 0) exactly as in the reference) ----
    bf_ = float(num_graphs)
    ratio = r_num / (r_num + env_num)
    loss1 = jnp.sum(jnp.abs(ratio - gamma), axis=0, keepdims=True) / bf_
    loss2 = jnp.sum(nz / count - gamma, axis=0, keepdims=True) / bf_
    loss_ref[...] = loss1 + loss2


def graph_env_aug_forward(params, x0, adj, onehot):
    assert NUM_LAYER >= 2 and RATIONALE_LAYERS == 2
    n, d = x0.shape
    b = onehot.shape[0]

    adj_bf16 = adj.astype(jnp.bfloat16)   # exact for a 0/1 adjacency -> lossless

    enc = params['graph_encoder']
    rat = params['rationale_gnn']
    gat = params['gate_nn']
    prd = params['predictor']

    args = (x0, adj_bf16, onehot,
            enc['w1'], enc['b1'], enc['w2'], enc['b2'],
            rat['w1'], rat['b1'], rat['w2'], rat['b2'],
            gat['w1'], gat['b1'], gat['w2'], gat['b2'],
            prd['w1'], prd['b1'], prd['w2'], prd['b2'])

    out_shapes = (
        jax.ShapeDtypeStruct((b + b * b, NUM_TASKS), jnp.float32),  # [pred_rem ; pred_rep]
        jax.ShapeDtypeStruct((b, d), jnp.float32),                  # reps (h_r)
        jax.ShapeDtypeStruct((1, 1), jnp.float32),                  # loss_reg
    )

    pred_all, reps, loss = pl.pallas_call(
        functools.partial(_grea_fused_kernel, n_enc=NUM_LAYER,
                          n_rat=RATIONALE_LAYERS, num_graphs=b, gamma=GAMMA),
        grid=(1,),
        in_specs=[_full_spec(a.shape) for a in args],
        out_specs=tuple(_full_spec(s.shape) for s in out_shapes),
        out_shape=out_shapes,
        compiler_params=pltpu.CompilerParams(
            dimension_semantics=("arbitrary",),
            vmem_limit_bytes=48 * 1024 * 1024),
    )(*args)

    return {'pred_rep': pred_all[b:], 'pred_rem': pred_all[:b],
            'loss_reg': loss[0, 0], 'reps': reps}


# --------------------------------------------------------------------------
# Parameter init (deterministic, shapes as in the PyTorch __init__),
# with eval-mode BatchNorm folded into the adjacent Linear layers.
# --------------------------------------------------------------------------

def _glorot(key, shape):
    fan_in, fan_out = shape
    lim = (6.0 / (fan_in + fan_out)) ** 0.5
    return jax.random.uniform(key, shape, jnp.float32, -lim, lim)


def _bn_fold(dim):
    # eval-mode BatchNorm1d: gamma=1, beta=0, running_mean=0, running_var=1
    scale = jnp.full((1, dim), 1.0 / (1.0 + BN_EPS) ** 0.5, jnp.float32)
    shift = jnp.zeros((1, dim), jnp.float32)
    return scale, shift


def _init_gnn_stack(key, num_layers, d):
    """GIN layers; both BNs (inside the GIN MLP and the per-layer BN) folded into W/b."""
    w1s, b1s, w2s, b2s = [], [], [], []
    for _ in range(num_layers):
        key, k1, k2 = jax.random.split(key, 3)
        s_in, t_in = _bn_fold(2 * d)        # BN inside the GIN MLP
        s_out, t_out = _bn_fold(d)          # per-layer BN in GNN_node
        w1 = _glorot(k1, (d, 2 * d)); b1 = jnp.zeros((1, 2 * d), jnp.float32)
        w2 = _glorot(k2, (2 * d, d)); b2 = jnp.zeros((1, d), jnp.float32)
        w1s.append(w1 * s_in); b1s.append(b1 * s_in + t_in)
        w2s.append(w2 * s_out); b2s.append(b2 * s_out + t_out)
    return dict(w1=jnp.stack(w1s), b1=jnp.stack(b1s),
                w2=jnp.stack(w2s), b2=jnp.stack(b2s))


def _init_mlp_head(key, d_in, d_hidden, d_out):
    k1, k2 = jax.random.split(key)
    s1, t1 = _bn_fold(d_hidden)
    w1 = _glorot(k1, (d_in, d_hidden)); b1 = jnp.zeros((1, d_hidden), jnp.float32)
    w2 = _glorot(k2, (d_hidden, d_out)); b2 = jnp.zeros((1, d_out), jnp.float32)
    return dict(w1=w1 * s1, b1=b1 * s1 + t1, w2=w2, b2=b2)


def init_params(key):
    k1, k2, k3, k4 = jax.random.split(key, 4)
    return dict(
        graph_encoder=_init_gnn_stack(k1, NUM_LAYER, EMB_DIM),
        rationale_gnn=_init_gnn_stack(k2, RATIONALE_LAYERS, EMB_DIM),
        gate_nn=_init_mlp_head(k3, EMB_DIM, 2 * EMB_DIM, 1),
        predictor=_init_mlp_head(k4, EMB_DIM, 2 * EMB_DIM, NUM_TASKS),
    )


# --------------------------------------------------------------------------

if __name__ == "__main__":
    key = jax.random.PRNGKey(0)
    N_NODES = 64
    NUM_GRAPHS = 4
    k_x, k_adj, k_p = jax.random.split(key, 3)

    # node embeddings (stand-in for AtomEncoder output)
    x0 = jax.random.normal(k_x, (N_NODES, EMB_DIM), jnp.float32)

    # node -> graph assignment (sorted, equal-size graphs) and its one-hot matrix
    batch = jnp.repeat(jnp.arange(NUM_GRAPHS), N_NODES // NUM_GRAPHS)
    onehot = (batch[None, :] == jnp.arange(NUM_GRAPHS)[:, None]).astype(jnp.float32)

    # block-diagonal (intra-graph), symmetric, zero-diagonal adjacency
    intra = onehot.T @ onehot
    rand = (jax.random.uniform(k_adj, (N_NODES, N_NODES)) < 0.3).astype(jnp.float32)
    adj = rand * intra * (1.0 - jnp.eye(N_NODES, dtype=jnp.float32))
    adj = jnp.maximum(adj, adj.T)

    params = init_params(k_p)

    out = graph_env_aug_forward(params, x0, adj, onehot)
    jax.block_until_ready(out)

    assert out['pred_rem'].shape == (NUM_GRAPHS, NUM_TASKS)
    assert out['pred_rep'].shape == (NUM_GRAPHS * NUM_GRAPHS, NUM_TASKS)
    assert out['reps'].shape == (NUM_GRAPHS, EMB_DIM)
    assert out['loss_reg'].shape == ()
    print("KERNEL_OK")
</pallas_src>

<mosaic_0001>
module attributes {stable_mosaic.version = 11 : i64} {
  func.func @_grea_fused_kernel(%arg0: i32, %arg1: memref<64x32xf32, #tpu.memory_space<vmem>>, %arg2: memref<64x64xbf16, #tpu.memory_space<vmem>>, %arg3: memref<4x64xf32, #tpu.memory_space<vmem>>, %arg4: memref<3x32x64xf32, #tpu.memory_space<vmem>>, %arg5: memref<3x1x64xf32, #tpu.memory_space<vmem>>, %arg6: memref<3x64x32xf32, #tpu.memory_space<vmem>>, %arg7: memref<3x1x32xf32, #tpu.memory_space<vmem>>, %arg8: memref<2x32x64xf32, #tpu.memory_space<vmem>>, %arg9: memref<2x1x64xf32, #tpu.memory_space<vmem>>, %arg10: memref<2x64x32xf32, #tpu.memory_space<vmem>>, %arg11: memref<2x1x32xf32, #tpu.memory_space<vmem>>, %arg12: memref<32x64xf32, #tpu.memory_space<vmem>>, %arg13: memref<1x64xf32, #tpu.memory_space<vmem>>, %arg14: memref<64x1xf32, #tpu.memory_space<vmem>>, %arg15: memref<1x1xf32, #tpu.memory_space<vmem>>, %arg16: memref<32x64xf32, #tpu.memory_space<vmem>>, %arg17: memref<1x64xf32, #tpu.memory_space<vmem>>, %arg18: memref<64x3xf32, #tpu.memory_space<vmem>>, %arg19: memref<1x3xf32, #tpu.memory_space<vmem>>, %arg20: memref<20x3xf32, #tpu.memory_space<vmem>>, %arg21: memref<4x32xf32, #tpu.memory_space<vmem>>, %arg22: memref<1x1xf32, #tpu.memory_space<vmem>>) attributes {dimension_semantics = [#tpu.dimension_semantics<arbitrary>], iteration_bounds = array<i64: 1>, scalar_prefetch = 0 : i64, scratch_operands = 0 : i64, tpu.core_type = #tpu.core_type<tc>, window_params = [{pipeline_mode = #tpu.pipeline_mode<synchronous>, transform_indices = @transform_0, window_bounds = array<i64: 64, 32>}, {pipeline_mode = #tpu.pipeline_mode<synchronous>, transform_indices = @transform_1, window_bounds = array<i64: 64, 64>}, {pipeline_mode = #tpu.pipeline_mode<synchronous>, transform_indices = @transform_2, window_bounds = array<i64: 4, 64>}, {pipeline_mode = #tpu.pipeline_mode<synchronous>, transform_indices = @transform_3, window_bounds = array<i64: 3, 32, 64>}, {pipeline_mode = #tpu.pipeline_mode<synchronous>, transform_indices = @transform_4, window_bounds = array<i64: 3, 1, 64>}, {pipeline_mode = #tpu.pipeline_mode<synchronous>, transform_indices = @transform_5, window_bounds = array<i64: 3, 64, 32>}, {pipeline_mode = #tpu.pipeline_mode<synchronous>, transform_indices = @transform_6, window_bounds = array<i64: 3, 1, 32>}, {pipeline_mode = #tpu.pipeline_mode<synchronous>, transform_indices = @transform_7, window_bounds = array<i64: 2, 32, 64>}, {pipeline_mode = #tpu.pipeline_mode<synchronous>, transform_indices = @transform_8, window_bounds = array<i64: 2, 1, 64>}, {pipeline_mode = #tpu.pipeline_mode<synchronous>, transform_indices = @transform_9, window_bounds = array<i64: 2, 64, 32>}, {pipeline_mode = #tpu.pipeline_mode<synchronous>, transform_indices = @transform_10, window_bounds = array<i64: 2, 1, 32>}, {pipeline_mode = #tpu.pipeline_mode<synchronous>, transform_indices = @transform_11, window_bounds = array<i64: 32, 64>}, {pipeline_mode = #tpu.pipeline_mode<synchronous>, transform_indices = @transform_12, window_bounds = array<i64: 1, 64>}, {pipeline_mode = #tpu.pipeline_mode<synchronous>, transform_indices = @transform_13, window_bounds = array<i64: 64, 1>}, {pipeline_mode = #tpu.pipeline_mode<synchronous>, transform_indices = @transform_14, window_bounds = array<i64: 1, 1>}, {pipeline_mode = #tpu.pipeline_mode<synchronous>, transform_indices = @transform_15, window_bounds = array<i64: 32, 64>}, {pipeline_mode = #tpu.pipeline_mode<synchronous>, transform_indices = @transform_16, window_bounds = array<i64: 1, 64>}, {pipeline_mode = #tpu.pipeline_mode<synchronous>, transform_indices = @transform_17, window_bounds = array<i64: 64, 3>}, {pipeline_mode = #tpu.pipeline_mode<synchronous>, transform_indices = @transform_18, window_bounds = array<i64: 1, 3>}, {pipeline_mode = #tpu.pipeline_mode<synchronous>, transform_indices = @transform_19, window_bounds = array<i64: 20, 3>}, {pipeline_mode = #tpu.pipeline_mode<synchronous>, transform_indices = @transform_20, window_bounds = array<i64: 4, 32>}, {pipeline_mode = #tpu.pipeline_mode<synchronous>, transform_indices = @transform_21, window_bounds = array<i64: 1, 1>}]} {
    %c0 = arith.constant 0 : index
    %c0_0 = arith.constant 0 : index
    %0 = vector.load %arg1[%c0, %c0_0] : memref<64x32xf32, #tpu.memory_space<vmem>>, vector<64x32xf32>
    %c0_1 = arith.constant 0 : index
    %c0_2 = arith.constant 0 : index
    %1 = vector.load %arg2[%c0_1, %c0_2] : memref<64x64xbf16, #tpu.memory_space<vmem>>, vector<64x64xbf16>
    %c0_3 = arith.constant 0 : index
    %c0_4 = arith.constant 0 : index
    %2 = vector.load %arg3[%c0_3, %c0_4] : memref<4x64xf32, #tpu.memory_space<vmem>>, vector<4x64xf32>
    %3 = arith.truncf %0 : vector<64x32xf32> to vector<64x32xbf16>
    %cst = arith.constant dense<0.000000e+00> : vector<64x32xf32>
    %4 = tpu.matmul %1, %3, %cst {dimension_numbers = #tpu.dot_dimension_numbers<[1], [0], [0], [1], [0, 0, 1, 1], [], []>} : vector<64x64xbf16>, vector<64x32xbf16>, vector<64x32xf32> -> vector<64x32xf32>
    %5 = arith.addf %0, %4 : vector<64x32xf32>
    %c0_5 = arith.constant 0 : index
    %c0_6 = arith.constant 0 : index
    %c0_7 = arith.constant 0 : index
    %6 = vector.load %arg4[%c0_5, %c0_6, %c0_7] : memref<3x32x64xf32, #tpu.memory_space<vmem>>, vector<1x32x64xf32>
    %7 = vector.shape_cast %6 : vector<1x32x64xf32> to vector<32x64xf32>
    %c0_8 = arith.constant 0 : index
    %c0_9 = arith.constant 0 : index
    %c0_10 = arith.constant 0 : index
    %8 = vector.load %arg5[%c0_8, %c0_9, %c0_10] : memref<3x1x64xf32, #tpu.memory_space<vmem>>, vector<1x1x64xf32>
    %9 = vector.shape_cast %8 : vector<1x1x64xf32> to vector<1x64xf32>
    %c0_11 = arith.constant 0 : index
    %c0_12 = arith.constant 0 : index
    %c0_13 = arith.constant 0 : index
    %10 = vector.load %arg6[%c0_11, %c0_12, %c0_13] : memref<3x64x32xf32, #tpu.memory_space<vmem>>, vector<1x64x32xf32>
    %11 = vector.shape_cast %10 : vector<1x64x32xf32> to vector<64x32xf32>
    %c0_14 = arith.constant 0 : index
    %c0_15 = arith.constant 0 : index
    %c0_16 = arith.constant 0 : index
    %12 = vector.load %arg7[%c0_14, %c0_15, %c0_16] : memref<3x1x32xf32, #tpu.memory_space<vmem>>, vector<1x1x32xf32>
    %13 = vector.shape_cast %12 : vector<1x1x32xf32> to vector<1x32xf32>
    %cst_17 = arith.constant dense<0.000000e+00> : vector<64x64xf32>
    %14 = tpu.matmul %5, %7, %cst_17 {dimension_numbers = #tpu.dot_dimension_numbers<[1], [0], [0], [1], [0, 0, 1, 1], [], []>} : vector<64x32xf32>, vector<32x64xf32>, vector<64x64xf32> -> vector<64x64xf32>
    %15 = vector.broadcast %9 : vector<1x64xf32> to vector<64x64xf32>
    %16 = arith.addf %14, %15 : vector<64x64xf32>
    %cst_18 = arith.constant 0.000000e+00 : f32
    %17 = vector.broadcast %cst_18 : f32 to vector<64x64xf32>
    %18 = arith.maximumf %16, %17 : vector<64x64xf32>
    %cst_19 = arith.constant dense<0.000000e+00> : vector<64x32xf32>
    %19 = tpu.matmul %18, %11, %cst_19 {dimension_numbers = #tpu.dot_dimension_numbers<[1], [0], [0], [1], [0, 0, 1, 1], [], []>} : vector<64x64xf32>, vector<64x32xf32>, vector<64x32xf32> -> vector<64x32xf32>
    %20 = vector.broadcast %13 : vector<1x32xf32> to vector<64x32xf32>
    %21 = arith.addf %19, %20 : vector<64x32xf32>
    %cst_20 = arith.constant 0.000000e+00 : f32
    %22 = vector.broadcast %cst_20 : f32 to vector<64x32xf32>
    %23 = arith.maximumf %21, %22 : vector<64x32xf32>
    %24 = arith.addf %23, %0 : vector<64x32xf32>
    %c0_21 = arith.constant 0 : index
    %c0_22 = arith.constant 0 : index
    %c0_23 = arith.constant 0 : index
    %25 = vector.load %arg8[%c0_21, %c0_22, %c0_23] : memref<2x32x64xf32, #tpu.memory_space<vmem>>, vector<1x32x64xf32>
    %26 = vector.shape_cast %25 : vector<1x32x64xf32> to vector<32x64xf32>
    %c0_24 = arith.constant 0 : index
    %c0_25 = arith.constant 0 : index
    %c0_26 = arith.constant 0 : index
    %27 = vector.load %arg9[%c0_24, %c0_25, %c0_26] : memref<2x1x64xf32, #tpu.memory_space<vmem>>, vector<1x1x64xf32>
    %28 = vector.shape_cast %27 : vector<1x1x64xf32> to vector<1x64xf32>
    %c0_27 = arith.constant 0 : index
    %c0_28 = arith.constant 0 : index
    %c0_29 = arith.constant 0 : index
    %29 = vector.load %arg10[%c0_27, %c0_28, %c0_29] : memref<2x64x32xf32, #tpu.memory_space<vmem>>, vector<1x64x32xf32>
    %30 = vector.shape_cast %29 : vector<1x64x32xf32> to vector<64x32xf32>
    %c0_30 = arith.constant 0 : index
    %c0_31 = arith.constant 0 : index
    %c0_32 = arith.constant 0 : index
    %31 = vector.load %arg11[%c0_30, %c0_31, %c0_32] : memref<2x1x32xf32, #tpu.memory_space<vmem>>, vector<1x1x32xf32>
    %32 = vector.shape_cast %31 : vector<1x1x32xf32> to vector<1x32xf32>
    %cst_33 = arith.constant dense<0.000000e+00> : vector<64x64xf32>
    %33 = tpu.matmul %5, %26, %cst_33 {dimension_numbers = #tpu.dot_dimension_numbers<[1], [0], [0], [1], [0, 0, 1, 1], [], []>} : vector<64x32xf32>, vector<32x64xf32>, vector<64x64xf32> -> vector<64x64xf32>
    %34 = vector.broadcast %28 : vector<1x64xf32> to vector<64x64xf32>
    %35 = arith.addf %33, %34 : vector<64x64xf32>
    %cst_34 = arith.constant 0.000000e+00 : f32
    %36 = vector.broadcast %cst_34 : f32 to vector<64x64xf32>
    %37 = arith.maximumf %35, %36 : vector<64x64xf32>
    %cst_35 = arith.constant dense<0.000000e+00> : vector<64x32xf32>
    %38 = tpu.matmul %37, %30, %cst_35 {dimension_numbers = #tpu.dot_dimension_numbers<[1], [0], [0], [1], [0, 0, 1, 1], [], []>} : vector<64x64xf32>, vector<64x32xf32>, vector<64x32xf32> -> vector<64x32xf32>
    %39 = vector.broadcast %32 : vector<1x32xf32> to vector<64x32xf32>
    %40 = arith.addf %38, %39 : vector<64x32xf32>
    %cst_36 = arith.constant 0.000000e+00 : f32
    %41 = vector.broadcast %cst_36 : f32 to vector<64x32xf32>
    %42 = arith.maximumf %40, %41 : vector<64x32xf32>
    %43 = arith.addf %42, %0 : vector<64x32xf32>
    %44 = tpu.concatenate %24, %43 in 1 : vector<64x32xf32>, vector<64x32xf32> -> vector<64x64xf32>
    %45 = arith.truncf %44 : vector<64x64xf32> to vector<64x64xbf16>
    %cst_37 = arith.constant dense<0.000000e+00> : vector<64x64xf32>
    %46 = tpu.matmul %1, %45, %cst_37 {dimension_numbers = #tpu.dot_dimension_numbers<[1], [0], [0], [1], [0, 0, 1, 1], [], []>} : vector<64x64xbf16>, vector<64x64xbf16>, vector<64x64xf32> -> vector<64x64xf32>
    %47 = vector.extract_strided_slice %46 {offsets = [0, 0], sizes = [64, 32], strides = [1, 1]} : vector<64x64xf32> to vector<64x32xf32>
    %48 = arith.addf %24, %47 : vector<64x32xf32>
    %c1 = arith.constant 1 : index
    %c0_38 = arith.constant 0 : index
    %c0_39 = arith.constant 0 : index
    %49 = vector.load %arg4[%c1, %c0_38, %c0_39] : memref<3x32x64xf32, #tpu.memory_space<vmem>>, vector<1x32x64xf32>
    %50 = vector.shape_cast %49 : vector<1x32x64xf32> to vector<32x64xf32>
    %c1_40 = arith.constant 1 : index
    %c0_41 = arith.constant 0 : index
    %c0_42 = arith.constant 0 : index
    %51 = vector.load %arg5[%c1_40, %c0_41, %c0_42] : memref<3x1x64xf32, #tpu.memory_space<vmem>>, vector<1x1x64xf32>
    %52 = vector.shape_cast %51 : vector<1x1x64xf32> to vector<1x64xf32>
    %c1_43 = arith.constant 1 : index
    %c0_44 = arith.constant 0 : index
    %c0_45 = arith.constant 0 : index
    %53 = vector.load %arg6[%c1_43, %c0_44, %c0_45] : memref<3x64x32xf32, #tpu.memory_space<vmem>>, vector<1x64x32xf32>
    %54 = vector.shape_cast %53 : vector<1x64x32xf32> to vector<64x32xf32>
    %c1_46 = arith.constant 1 : index
    %c0_47 = arith.constant 0 : index
    %c0_48 = arith.constant 0 : index
    %55 = vector.load %arg7[%c1_46, %c0_47, %c0_48] : memref<3x1x32xf32, #tpu.memory_space<vmem>>, vector<1x1x32xf32>
    %56 = vector.shape_cast %55 : vector<1x1x32xf32> to vector<1x32xf32>
    %cst_49 = arith.constant dense<0.000000e+00> : vector<64x64xf32>
    %57 = tpu.matmul %48, %50, %cst_49 {dimension_numbers = #tpu.dot_dimension_numbers<[1], [0], [0], [1], [0, 0, 1, 1], [], []>} : vector<64x32xf32>, vector<32x64xf32>, vector<64x64xf32> -> vector<64x64xf32>
    %58 = vector.broadcast %52 : vector<1x64xf32> to vector<64x64xf32>
    %59 = arith.addf %57, %58 : vector<64x64xf32>
    %cst_50 = arith.constant 0.000000e+00 : f32
    %60 = vector.broadcast %cst_50 : f32 to vector<64x64xf32>
    %61 = arith.maximumf %59, %60 : vector<64x64xf32>
    %cst_51 = arith.constant dense<0.000000e+00> : vector<64x32xf32>
    %62 = tpu.matmul %61, %54, %cst_51 {dimension_numbers = #tpu.dot_dimension_numbers<[1], [0], [0], [1], [0, 0, 1, 1], [], []>} : vector<64x64xf32>, vector<64x32xf32>, vector<64x32xf32> -> vector<64x32xf32>
    %63 = vector.broadcast %56 : vector<1x32xf32> to vector<64x32xf32>
    %64 = arith.addf %62, %63 : vector<64x32xf32>
    %cst_52 = arith.constant 0.000000e+00 : f32
    %65 = vector.broadcast %cst_52 : f32 to vector<64x32xf32>
    %66 = arith.maximumf %64, %65 : vector<64x32xf32>
    %67 = arith.addf %66, %24 : vector<64x32xf32>
    %68 = vector.extract_strided_slice %46 {offsets = [0, 32], sizes = [64, 32], strides = [1, 1]} : vector<64x64xf32> to vector<64x32xf32>
    %69 = arith.addf %43, %68 : vector<64x32xf32>
    %c1_53 = arith.constant 1 : index
    %c0_54 = arith.constant 0 : index
    %c0_55 = arith.constant 0 : index
    %70 = vector.load %arg8[%c1_53, %c0_54, %c0_55] : memref<2x32x64xf32, #tpu.memory_space<vmem>>, vector<1x32x64xf32>
    %71 = vector.shape_cast %70 : vector<1x32x64xf32> to vector<32x64xf32>
    %c1_56 = arith.constant 1 : index
    %c0_57 = arith.constant 0 : index
    %c0_58 = arith.constant 0 : index
    %72 = vector.load %arg9[%c1_56, %c0_57, %c0_58] : memref<2x1x64xf32, #tpu.memory_space<vmem>>, vector<1x1x64xf32>
    %73 = vector.shape_cast %72 : vector<1x1x64xf32> to vector<1x64xf32>
    %c1_59 = arith.constant 1 : index
    %c0_60 = arith.constant 0 : index
    %c0_61 = arith.constant 0 : index
    %74 = vector.load %arg10[%c1_59, %c0_60, %c0_61] : memref<2x64x32xf32, #tpu.memory_space<vmem>>, vector<1x64x32xf32>
    %75 = vector.shape_cast %74 : vector<1x64x32xf32> to vector<64x32xf32>
    %c1_62 = arith.constant 1 : index
    %c0_63 = arith.constant 0 : index
    %c0_64 = arith.constant 0 : index
    %76 = vector.load %arg11[%c1_62, %c0_63, %c0_64] : memref<2x1x32xf32, #tpu.memory_space<vmem>>, vector<1x1x32xf32>
    %77 = vector.shape_cast %76 : vector<1x1x32xf32> to vector<1x32xf32>
    %cst_65 = arith.constant dense<0.000000e+00> : vector<64x64xf32>
    %78 = tpu.matmul %69, %71, %cst_65 {dimension_numbers = #tpu.dot_dimension_numbers<[1], [0], [0], [1], [0, 0, 1, 1], [], []>} : vector<64x32xf32>, vector<32x64xf32>, vector<64x64xf32> -> vector<64x64xf32>
    %79 = vector.broadcast %73 : vector<1x64xf32> to vector<64x64xf32>
    %80 = arith.addf %78, %79 : vector<64x64xf32>
    %cst_66 = arith.constant 0.000000e+00 : f32
    %81 = vector.broadcast %cst_66 : f32 to vector<64x64xf32>
    %82 = arith.maximumf %80, %81 : vector<64x64xf32>
    %cst_67 = arith.constant dense<0.000000e+00> : vector<64x32xf32>
    %83 = tpu.matmul %82, %75, %cst_67 {dimension_numbers = #tpu.dot_dimension_numbers<[1], [0], [0], [1], [0, 0, 1, 1], [], []>} : vector<64x64xf32>, vector<64x32xf32>, vector<64x32xf32> -> vector<64x32xf32>
    %84 = vector.broadcast %77 : vector<1x32xf32> to vector<64x32xf32>
    %85 = arith.addf %83, %84 : vector<64x32xf32>
    %86 = arith.addf %85, %43 : vector<64x32xf32>
    %87 = arith.truncf %67 : vector<64x32xf32> to vector<64x32xbf16>
    %cst_68 = arith.constant dense<0.000000e+00> : vector<64x32xf32>
    %88 = tpu.matmul %1, %87, %cst_68 {dimension_numbers = #tpu.dot_dimension_numbers<[1], [0], [0], [1], [0, 0, 1, 1], [], []>} : vector<64x64xbf16>, vector<64x32xbf16>, vector<64x32xf32> -> vector<64x32xf32>
    %89 = arith.addf %67, %88 : vector<64x32xf32>
    %c2 = arith.constant 2 : index
    %c0_69 = arith.constant 0 : index
    %c0_70 = arith.constant 0 : index
    %90 = vector.load %arg4[%c2, %c0_69, %c0_70] : memref<3x32x64xf32, #tpu.memory_space<vmem>>, vector<1x32x64xf32>
    %91 = vector.shape_cast %90 : vector<1x32x64xf32> to vector<32x64xf32>
    %c2_71 = arith.constant 2 : index
    %c0_72 = arith.constant 0 : index
    %c0_73 = arith.constant 0 : index
    %92 = vector.load %arg5[%c2_71, %c0_72, %c0_73] : memref<3x1x64xf32, #tpu.memory_space<vmem>>, vector<1x1x64xf32>
    %93 = vector.shape_cast %92 : vector<1x1x64xf32> to vector<1x64xf32>
    %c2_74 = arith.constant 2 : index
    %c0_75 = arith.constant 0 : index
    %c0_76 = arith.constant 0 : index
    %94 = vector.load %arg6[%c2_74, %c0_75, %c0_76] : memref<3x64x32xf32, #tpu.memory_space<vmem>>, vector<1x64x32xf32>
    %95 = vector.shape_cast %94 : vector<1x64x32xf32> to vector<64x32xf32>
    %c2_77 = arith.constant 2 : index
    %c0_78 = arith.constant 0 : index
    %c0_79 = arith.constant 0 : index
    %96 = vector.load %arg7[%c2_77, %c0_78, %c0_79] : memref<3x1x32xf32, #tpu.memory_space<vmem>>, vector<1x1x32xf32>
    %97 = vector.shape_cast %96 : vector<1x1x32xf32> to vector<1x32xf32>
    %cst_80 = arith.constant dense<0.000000e+00> : vector<64x64xf32>
    %98 = tpu.matmul %89, %91, %cst_80 {dimension_numbers = #tpu.dot_dimension_numbers<[1], [0], [0], [1], [0, 0, 1, 1], [], []>} : vector<64x32xf32>, vector<32x64xf32>, vector<64x64xf32> -> vector<64x64xf32>
    %99 = vector.broadcast %93 : vector<1x64xf32> to vector<64x64xf32>
    %100 = arith.addf %98, %99 : vector<64x64xf32>
    %cst_81 = arith.constant 0.000000e+00 : f32
    %101 = vector.broadcast %cst_81 : f32 to vector<64x64xf32>
    %102 = arith.maximumf %100, %101 : vector<64x64xf32>
    %cst_82 = arith.constant dense<0.000000e+00> : vector<64x32xf32>
    %103 = tpu.matmul %102, %95, %cst_82 {dimension_numbers = #tpu.dot_dimension_numbers<[1], [0], [0], [1], [0, 0, 1, 1], [], []>} : vector<64x64xf32>, vector<64x32xf32>, vector<64x32xf32> -> vector<64x32xf32>
    %104 = vector.broadcast %97 : vector<1x32xf32> to vector<64x32xf32>
    %105 = arith.addf %103, %104 : vector<64x32xf32>
    %106 = arith.addf %105, %67 : vector<64x32xf32>
    %c0_83 = arith.constant 0 : index
    %c0_84 = arith.constant 0 : index
    %107 = vector.load %arg12[%c0_83, %c0_84] : memref<32x64xf32, #tpu.memory_space<vmem>>, vector<32x64xf32>
    %cst_85 = arith.constant dense<0.000000e+00> : vector<64x64xf32>
    %108 = tpu.matmul %86, %107, %cst_85 {dimension_numbers = #tpu.dot_dimension_numbers<[1], [0], [0], [1], [0, 0, 1, 1], [], []>} : vector<64x32xf32>, vector<32x64xf32>, vector<64x64xf32> -> vector<64x64xf32>
    %c0_86 = arith.constant 0 : index
    %c0_87 = arith.constant 0 : index
    %109 = vector.load %arg13[%c0_86, %c0_87] : memref<1x64xf32, #tpu.memory_space<vmem>>, vector<1x64xf32>
    %110 = vector.broadcast %109 : vector<1x64xf32> to vector<64x64xf32>
    %111 = arith.addf %108, %110 : vector<64x64xf32>
    %cst_88 = arith.constant 0.000000e+00 : f32
    %112 = vector.broadcast %cst_88 : f32 to vector<64x64xf32>
    %113 = arith.maximumf %111, %112 : vector<64x64xf32>
    %c0_89 = arith.constant 0 : index
    %c0_90 = arith.constant 0 : index
    %114 = vector.load %arg14[%c0_89, %c0_90] : memref<64x1xf32, #tpu.memory_space<vmem>>, vector<64x1xf32>
    %cst_91 = arith.constant dense<0.000000e+00> : vector<64x1xf32>
    %115 = tpu.matmul %113, %114, %cst_91 {dimension_numbers = #tpu.dot_dimension_numbers<[1], [0], [0], [1], [0, 0, 1, 1], [], []>} : vector<64x64xf32>, vector<64x1xf32>, vector<64x1xf32> -> vector<64x1xf32>
    %c0_92 = arith.constant 0 : index
    %c0_93 = arith.constant 0 : index
    %116 = vector.load %arg15[%c0_92, %c0_93] : memref<1x1xf32, #tpu.memory_space<vmem>>, vector<1x1xf32>
    %117 = vector.broadcast %116 : vector<1x1xf32> to vector<64x1xf32>
    %118 = arith.addf %115, %117 : vector<64x1xf32>
    %119 = arith.negf %118 : vector<64x1xf32>
    %120 = math.exp %119 : vector<64x1xf32>
    %cst_94 = arith.constant 1.000000e+00 : f32
    %121 = vector.broadcast %cst_94 : f32 to vector<64x1xf32>
    %122 = arith.addf %121, %120 : vector<64x1xf32>
    %123 = arith.divf %121, %122 : vector<64x1xf32>
    %124 = vector.broadcast %123 : vector<64x1xf32> to vector<64x32xf32>
    %125 = arith.mulf %124, %106 : vector<64x32xf32>
    %cst_95 = arith.constant dense<0.000000e+00> : vector<4x32xf32>
    %126 = tpu.matmul %2, %125, %cst_95 {dimension_numbers = #tpu.dot_dimension_numbers<[1], [0], [0], [1], [0, 0, 1, 1], [], []>} : vector<4x64xf32>, vector<64x32xf32>, vector<4x32xf32> -> vector<4x32xf32>
    %cst_96 = arith.constant dense<0.000000e+00> : vector<4x32xf32>
    %127 = tpu.matmul %2, %106, %cst_96 {dimension_numbers = #tpu.dot_dimension_numbers<[1], [0], [0], [1], [0, 0, 1, 1], [], []>} : vector<4x64xf32>, vector<64x32xf32>, vector<4x32xf32> -> vector<4x32xf32>
    %128 = arith.subf %127, %126 : vector<4x32xf32>
    %cst_97 = arith.constant dense<0.000000e+00> : vector<4x1xf32>
    %129 = tpu.matmul %2, %123, %cst_97 {dimension_numbers = #tpu.dot_dimension_numbers<[1], [0], [0], [1], [0, 0, 1, 1], [], []>} : vector<4x64xf32>, vector<64x1xf32>, vector<4x1xf32> -> vector<4x1xf32>
    %cst_98 = arith.constant 0.000000e+00 : f32
    %130 = vector.broadcast %cst_98 : f32 to vector<64x1xf32>
    %131 = arith.cmpf ogt, %123, %130 : vector<64x1xf32>
    %132 = arith.extui %131 : vector<64x1xi1> to vector<64x1xi32>
    %133 = arith.sitofp %132 : vector<64x1xi32> to vector<64x1xf32>
    %cst_99 = arith.constant dense<0.000000e+00> : vector<4x1xf32>
    %134 = tpu.matmul %2, %133, %cst_99 {dimension_numbers = #tpu.dot_dimension_numbers<[1], [0], [0], [1], [0, 0, 1, 1], [], []>} : vector<4x64xf32>, vector<64x1xf32>, vector<4x1xf32> -> vector<4x1xf32>
    %cst_100 = arith.constant dense<0.000000e+00> : vector<4xf32>
    %135 = vector.multi_reduction <add>, %2, %cst_100 [1] : vector<4x64xf32> to vector<4xf32>
    %136 = vector.shape_cast %135 : vector<4xf32> to vector<4x1xf32>
    %cst_101 = arith.constant 9.99999993E-9 : f32
    %137 = vector.broadcast %cst_101 : f32 to vector<4x1xf32>
    %138 = arith.addf %129, %137 : vector<4x1xf32>
    %139 = arith.subf %136, %129 : vector<4x1xf32>
    %cst_102 = arith.constant 9.99999993E-9 : f32
    %140 = vector.broadcast %cst_102 : f32 to vector<4x1xf32>
    %141 = arith.addf %139, %140 : vector<4x1xf32>
    %142 = vector.extract_strided_slice %126 {offsets = [0, 0], sizes = [1, 32], strides = [1, 1]} : vector<4x32xf32> to vector<1x32xf32>
    %143 = vector.shape_cast %142 : vector<1x32xf32> to vector<1x32xf32>
    %144 = vector.broadcast %143 : vector<1x32xf32> to vector<4x32xf32>
    %145 = vector.extract_strided_slice %126 {offsets = [1, 0], sizes = [1, 32], strides = [1, 1]} : vector<4x32xf32> to vector<1x32xf32>
    %146 = vector.shape_cast %145 : vector<1x32xf32> to vector<1x32xf32>
    %147 = vector.broadcast %146 : vector<1x32xf32> to vector<4x32xf32>
    %148 = vector.extract_strided_slice %126 {offsets = [2, 0], sizes = [1, 32], strides = [1, 1]} : vector<4x32xf32> to vector<1x32xf32>
    %149 = vector.shape_cast %148 : vector<1x32xf32> to vector<1x32xf32>
    %150 = vector.broadcast %149 : vector<1x32xf32> to vector<4x32xf32>
    %151 = vector.extract_strided_slice %126 {offsets = [3, 0], sizes = [1, 32], strides = [1, 1]} : vector<4x32xf32> to vector<1x32xf32>
    %152 = vector.shape_cast %151 : vector<1x32xf32> to vector<1x32xf32>
    %153 = vector.broadcast %152 : vector<1x32xf32> to vector<4x32xf32>
    %154 = tpu.concatenate %144, %147, %150, %153 in 0 : vector<4x32xf32>, vector<4x32xf32>, vector<4x32xf32>, vector<4x32xf32> -> vector<16x32xf32>
    %155 = tpu.concatenate %128, %128, %128, %128 in 0 : vector<4x32xf32>, vector<4x32xf32>, vector<4x32xf32>, vector<4x32xf32> -> vector<16x32xf32>
    %cst_103 = arith.constant 5.000000e-01 : f32
    %156 = vector.broadcast %cst_103 : f32 to vector<16x32xf32>
    %157 = arith.mulf %156, %155 : vector<16x32xf32>
    %158 = arith.addf %154, %157 : vector<16x32xf32>
    %159 = tpu.concatenate %126, %158 in 0 : vector<4x32xf32>, vector<16x32xf32> -> vector<20x32xf32>
    %c0_104 = arith.constant 0 : index
    %c0_105 = arith.constant 0 : index
    %160 = vector.load %arg16[%c0_104, %c0_105] : memref<32x64xf32, #tpu.memory_space<vmem>>, vector<32x64xf32>
    %cst_106 = arith.constant dense<0.000000e+00> : vector<20x64xf32>
    %161 = tpu.matmul %159, %160, %cst_106 {dimension_numbers = #tpu.dot_dimension_numbers<[1], [0], [0], [1], [0, 0, 1, 1], [], []>} : vector<20x32xf32>, vector<32x64xf32>, vector<20x64xf32> -> vector<20x64xf32>
    %c0_107 = arith.constant 0 : index
    %c0_108 = arith.constant 0 : index
    %162 = vector.load %arg17[%c0_107, %c0_108] : memref<1x64xf32, #tpu.memory_space<vmem>>, vector<1x64xf32>
    %163 = vector.broadcast %162 : vector<1x64xf32> to vector<20x64xf32>
    %164 = arith.addf %161, %163 : vector<20x64xf32>
    %cst_109 = arith.constant 0.000000e+00 : f32
    %165 = vector.broadcast %cst_109 : f32 to vector<20x64xf32>
    %166 = arith.maximumf %164, %165 : vector<20x64xf32>
    %c0_110 = arith.constant 0 : index
    %c0_111 = arith.constant 0 : index
    %167 = vector.load %arg18[%c0_110, %c0_111] : memref<64x3xf32, #tpu.memory_space<vmem>>, vector<64x3xf32>
    %cst_112 = arith.constant dense<0.000000e+00> : vector<20x3xf32>
    %168 = tpu.matmul %166, %167, %cst_112 {dimension_numbers = #tpu.dot_dimension_numbers<[1], [0], [0], [1], [0, 0, 1, 1], [], []>} : vector<20x64xf32>, vector<64x3xf32>, vector<20x3xf32> -> vector<20x3xf32>
    %c0_113 = arith.constant 0 : index
    %c0_114 = arith.constant 0 : index
    %169 = vector.load %arg19[%c0_113, %c0_114] : memref<1x3xf32, #tpu.memory_space<vmem>>, vector<1x3xf32>
    %170 = vector.broadcast %169 : vector<1x3xf32> to vector<20x3xf32>
    %171 = arith.addf %168, %170 : vector<20x3xf32>
    %c0_115 = arith.constant 0 : index
    %c0_116 = arith.constant 0 : index
    %172 = vector.load %arg20[%c0_115, %c0_116] : memref<20x3xf32, #tpu.memory_space<vmem>>, vector<20x3xf32>
    tpu.vector_store %arg20[%c0_115, %c0_116], %171 {strides = array<i32>} : memref<20x3xf32, #tpu.memory_space<vmem>>, vector<20x3xf32>,
    %c0_117 = arith.constant 0 : index
    %c0_118 = arith.constant 0 : index
    %173 = vector.load %arg21[%c0_117, %c0_118] : memref<4x32xf32, #tpu.memory_space<vmem>>, vector<4x32xf32>
    tpu.vector_store %arg21[%c0_117, %c0_118], %126 {strides = array<i32>} : memref<4x32xf32, #tpu.memory_space<vmem>>, vector<4x32xf32>,
    %174 = arith.addf %138, %141 : vector<4x1xf32>
    %175 = arith.divf %138, %174 : vector<4x1xf32>
    %cst_119 = arith.constant 4.000000e-01 : f32
    %176 = vector.broadcast %cst_119 : f32 to vector<4x1xf32>
    %177 = arith.subf %175, %176 : vector<4x1xf32>
    %178 = math.absf %177 : vector<4x1xf32>
    %cst_120 = arith.constant dense<0.000000e+00> : vector<1xf32>
    %179 = vector.multi_reduction <add>, %178, %cst_120 [0] : vector<4x1xf32> to vector<1xf32>
    %180 = vector.shape_cast %179 : vector<1xf32> to vector<1x1xf32>
    %cst_121 = arith.constant 4.000000e+00 : f32
    %181 = vector.broadcast %cst_121 : f32 to vector<1x1xf32>
    %182 = arith.divf %180, %181 : vector<1x1xf32>
    %183 = arith.divf %134, %136 : vector<4x1xf32>
    %cst_122 = arith.constant 4.000000e-01 : f32
    %184 = vector.broadcast %cst_122 : f32 to vector<4x1xf32>
    %185 = arith.subf %183, %184 : vector<4x1xf32>
    %cst_123 = arith.constant dense<0.000000e+00> : vector<1xf32>
    %186 = vector.multi_reduction <add>, %185, %cst_123 [0] : vector<4x1xf32> to vector<1xf32>
    %187 = vector.shape_cast %186 : vector<1xf32> to vector<1x1xf32>
    %cst_124 = arith.constant 4.000000e+00 : f32
    %188 = vector.broadcast %cst_124 : f32 to vector<1x1xf32>
    %189 = arith.divf %187, %188 : vector<1x1xf32>
    %190 = arith.addf %182, %189 : vector<1x1xf32>
    %c0_125 = arith.constant 0 : index
    %c0_126 = arith.constant 0 : index
    %191 = vector.load %arg22[%c0_125, %c0_126] : memref<1x1xf32, #tpu.memory_space<vmem>>, vector<1x1xf32>
    tpu.vector_store %arg22[%c0_125, %c0_126], %190 {strides = array<i32>} : memref<1x1xf32, #tpu.memory_space<vmem>>, vector<1x1xf32>,
    return
  }
  func.func @transform_0(%arg0: i32) -> (i32, i32) {
    %c0_i32 = arith.constant 0 : i32
    %c0_i32_0 = arith.constant 0 : i32
    %c0_i32_1 = arith.constant 0 : i32
    return %c0_i32, %c0_i32_0 : i32, i32
  }
  func.func @transform_1(%arg0: i32) -> (i32, i32) {
    %c0_i32 = arith.constant 0 : i32
    %c0_i32_0 = arith.constant 0 : i32
    %c0_i32_1 = arith.constant 0 : i32
    return %c0_i32, %c0_i32_0 : i32, i32
  }
  func.func @transform_2(%arg0: i32) -> (i32, i32) {
    %c0_i32 = arith.constant 0 : i32
    %c0_i32_0 = arith.constant 0 : i32
    %c0_i32_1 = arith.constant 0 : i32
    return %c0_i32, %c0_i32_0 : i32, i32
  }
  func.func @transform_3(%arg0: i32) -> (i32, i32, i32) {
    %c0_i32 = arith.constant 0 : i32
    %c0_i32_0 = arith.constant 0 : i32
    %c0_i32_1 = arith.constant 0 : i32
    %c0_i32_2 = arith.constant 0 : i32
    return %c0_i32, %c0_i32_0, %c0_i32_1 : i32, i32, i32
  }
  func.func @transform_4(%arg0: i32) -> (i32, i32, i32) {
    %c0_i32 = arith.constant 0 : i32
    %c0_i32_0 = arith.constant 0 : i32
    %c0_i32_1 = arith.constant 0 : i32
    %c0_i32_2 = arith.constant 0 : i32
    return %c0_i32, %c0_i32_0, %c0_i32_1 : i32, i32, i32
  }
  func.func @transform_5(%arg0: i32) -> (i32, i32, i32) {
    %c0_i32 = arith.constant 0 : i32
    %c0_i32_0 = arith.constant 0 : i32
    %c0_i32_1 = arith.constant 0 : i32
    %c0_i32_2 = arith.constant 0 : i32
    return %c0_i32, %c0_i32_0, %c0_i32_1 : i32, i32, i32
  }
  func.func @transform_6(%arg0: i32) -> (i32, i32, i32) {
    %c0_i32 = arith.constant 0 : i32
    %c0_i32_0 = arith.constant 0 : i32
    %c0_i32_1 = arith.constant 0 : i32
    %c0_i32_2 = arith.constant 0 : i32
    return %c0_i32, %c0_i32_0, %c0_i32_1 : i32, i32, i32
  }
  func.func @transform_7(%arg0: i32) -> (i32, i32, i32) {
    %c0_i32 = arith.constant 0 : i32
    %c0_i32_0 = arith.constant 0 : i32
    %c0_i32_1 = arith.constant 0 : i32
    %c0_i32_2 = arith.constant 0 : i32
    return %c0_i32, %c0_i32_0, %c0_i32_1 : i32, i32, i32
  }
  func.func @transform_8(%arg0: i32) -> (i32, i32, i32) {
    %c0_i32 = arith.constant 0 : i32
    %c0_i32_0 = arith.constant 0 : i32
    %c0_i32_1 = arith.constant 0 : i32
    %c0_i32_2 = arith.constant 0 : i32
    return %c0_i32, %c0_i32_0, %c0_i32_1 : i32, i32, i32
  }
  func.func @transform_9(%arg0: i32) -> (i32, i32, i32) {
    %c0_i32 = arith.constant 0 : i32
    %c0_i32_0 = arith.constant 0 : i32
    %c0_i32_1 = arith.constant 0 : i32
    %c0_i32_2 = arith.constant 0 : i32
    return %c0_i32, %c0_i32_0, %c0_i32_1 : i32, i32, i32
  }
  func.func @transform_10(%arg0: i32) -> (i32, i32, i32) {
    %c0_i32 = arith.constant 0 : i32
    %c0_i32_0 = arith.constant 0 : i32
    %c0_i32_1 = arith.constant 0 : i32
    %c0_i32_2 = arith.constant 0 : i32
    return %c0_i32, %c0_i32_0, %c0_i32_1 : i32, i32, i32
  }
  func.func @transform_11(%arg0: i32) -> (i32, i32) {
    %c0_i32 = arith.constant 0 : i32
    %c0_i32_0 = arith.constant 0 : i32
    %c0_i32_1 = arith.constant 0 : i32
    return %c0_i32, %c0_i32_0 : i32, i32
  }
  func.func @transform_12(%arg0: i32) -> (i32, i32) {
    %c0_i32 = arith.constant 0 : i32
    %c0_i32_0 = arith.constant 0 : i32
    %c0_i32_1 = arith.constant 0 : i32
    return %c0_i32, %c0_i32_0 : i32, i32
  }
  func.func @transform_13(%arg0: i32) -> (i32, i32) {
    %c0_i32 = arith.constant 0 : i32
    %c0_i32_0 = arith.constant 0 : i32
    %c0_i32_1 = arith.constant 0 : i32
    return %c0_i32, %c0_i32_0 : i32, i32
  }
  func.func @transform_14(%arg0: i32) -> (i32, i32) {
    %c0_i32 = arith.constant 0 : i32
    %c0_i32_0 = arith.constant 0 : i32
    %c0_i32_1 = arith.constant 0 : i32
    return %c0_i32, %c0_i32_0 : i32, i32
  }
  func.func @transform_15(%arg0: i32) -> (i32, i32) {
    %c0_i32 = arith.constant 0 : i32
    %c0_i32_0 = arith.constant 0 : i32
    %c0_i32_1 = arith.constant 0 : i32
    return %c0_i32, %c0_i32_0 : i32, i32
  }
  func.func @transform_16(%arg0: i32) -> (i32, i32) {
    %c0_i32 = arith.constant 0 : i32
    %c0_i32_0 = arith.constant 0 : i32
    %c0_i32_1 = arith.constant 0 : i32
    return %c0_i32, %c0_i32_0 : i32, i32
  }
  func.func @transform_17(%arg0: i32) -> (i32, i32) {
    %c0_i32 = arith.constant 0 : i32
    %c0_i32_0 = arith.constant 0 : i32
    %c0_i32_1 = arith.constant 0 : i32
    return %c0_i32, %c0_i32_0 : i32, i32
  }
  func.func @transform_18(%arg0: i32) -> (i32, i32) {
    %c0_i32 = arith.constant 0 : i32
    %c0_i32_0 = arith.constant 0 : i32
    %c0_i32_1 = arith.constant 0 : i32
    return %c0_i32, %c0_i32_0 : i32, i32
  }
  func.func @transform_19(%arg0: i32) -> (i32, i32) {
    %c0_i32 = arith.constant 0 : i32
    %c0_i32_0 = arith.constant 0 : i32
    %c0_i32_1 = arith.constant 0 : i32
    return %c0_i32, %c0_i32_0 : i32, i32
  }
  func.func @transform_20(%arg0: i32) -> (i32, i32) {
    %c0_i32 = arith.constant 0 : i32
    %c0_i32_0 = arith.constant 0 : i32
    %c0_i32_1 = arith.constant 0 : i32
    return %c0_i32, %c0_i32_0 : i32, i32
  }
  func.func @transform_21(%arg0: i32) -> (i32, i32) {
    %c0_i32 = arith.constant 0 : i32
    %c0_i32_0 = arith.constant 0 : i32
    %c0_i32_1 = arith.constant 0 : i32
    return %c0_i32, %c0_i32_0 : i32, i32
  }
}

</mosaic_0001>

<bundles_post_ra>
// kernel: tpu_custom_call.1
= control target key start
LH: loop header
LB: loop body
LE: loop exit
PB: predicated region body
PF: predicated region fallthrough
CT: control target
= control target key end

     0   :  { %s5123_s0 = inlined_call_operand.vmem [shape: f32[64,32], index: 0, kind: input, shape index: {}]   ;;  %s5124_s1 = inlined_call_operand.vmem [shape: bf16[64,64], index: 1, kind: input, shape index: {}]   ;;  %s5125_s2 = inlined_call_operand.vmem [shape: f32[4,64], index: 2, kind: input, shape index: {}]   ;;  %s5126_s3 = inlined_call_operand.vmem [shape: f32[3,32,64], index: 3, kind: input, shape index: {}]   ;;  %s5127_s4 = inlined_call_operand.vmem [shape: f32[3,1,64], index: 4, kind: input, shape index: {}]   ;;  %s5128_s5 = inlined_call_operand.vmem [shape: f32[3,64,32], index: 5, kind: input, shape index: {}]   ;;  %s5129_s6 = inlined_call_operand.vmem [shape: f32[3,1,32], index: 6, kind: input, shape index: {}]   ;;  %s5130_s7 = inlined_call_operand.vmem [shape: f32[2,32,64], index: 7, kind: input, shape index: {}]   ;;  %s5131_s8 = inlined_call_operand.vmem [shape: f32[2,1,64], index: 8, kind: input, shape index: {}]   ;;  %s5132_s9 = inlined_call_operand.vmem [shape: f32[2,64,32], index: 9, kind: input, shape index: {}]   ;;  %s5133_s10 = inlined_call_operand.vmem [shape: f32[2,1,32], index: 10, kind: input, shape index: {}]   ;;  %s5134_s11 = inlined_call_operand.vmem [shape: f32[32,64], index: 11, kind: input, shape index: {}]   ;;  %s5135_s12 = inlined_call_operand.vmem [shape: f32[1,64], index: 12, kind: input, shape index: {}]   ;;  %s5136_s13 = inlined_call_operand.vmem [shape: f32[64,1], index: 13, kind: input, shape index: {}]   ;;  %s5137_s14 = inlined_call_operand.<no memory space> [shape: f32[1,1], index: 14, kind: input, shape index: {}]   ;;  %s5138_s15 = inlined_call_operand.vmem [shape: f32[32,64], index: 15, kind: input, shape index: {}]   ;;  %s5139_s16 = inlined_call_operand.vmem [shape: f32[1,64], index: 16, kind: input, shape index: {}]   ;;  %s5140_s17 = inlined_call_operand.vmem [shape: f32[64,3], index: 17, kind: input, shape index: {}]   ;;  %s5141_s18 = inlined_call_operand.vmem [shape: f32[1,3], index: 18, kind: input, shape index: {}]   ;;  %s5142_s19 = inlined_call_operand.vmem [shape: f32[20,3], index: 19, kind: output, shape index: {0}]   ;;  %s5143_s20 = inlined_call_operand.hbm [shape: f32[4,32], index: 20, kind: output, shape index: {1}]   ;;  %s5144_s21 = inlined_call_operand.hbm [shape: f32[1,1], index: 21, kind: output, shape index: {2}]  }
   0x1   :  { %5150 = sst [smem:[#allocation9_spill]] %s5123_s0  ;;  %v27_v0 = vstv %s5137_s14 }
   0x2   :  { %5151 = sst [smem:[#allocation10_spill]] %s5124_s1  ;;  %28 = vst [vmem:[#allocation2] sm:$0x1] %v27_v0 }
   0x3   :  { %5152 = sst [smem:[#allocation11_spill]] %s5125_s2 }
   0x4   :  { %5153 = sst [smem:[#allocation12_spill]] %s5126_s3 }
   0x5   :  { %5154 = sst [smem:[#allocation13_spill]] %s5127_s4 }
   0x6   :  { %5155 = sst [smem:[#allocation14_spill]] %s5128_s5 }
   0x7   :  { %29 = vsyncpa [#allocation4], 0  ;;  %s5156_s3 = sld [smem:[#allocation9_spill]]  ;;  %s5157_s25 = sld [smem:[#allocation10_spill]]  ;;  %vm111_vm0 = vcmask 523264  }
   0xd   :  { %v4320_v1 = vld [vmem:[%s5156_s3] sm:$0xff]  ;;  %v4325_v2 = vld [vmem:[%s5156_s3 + $0x8] sm:$0xff]  ;;  %v4330_v3 = vld [vmem:[%s5156_s3 + $0x10] sm:$0xff] }
   0xe   :  { %v87_v4 = vpack.c.bf16 %v4325_v2, %v4320_v1  ;;  %v4337_v5 = vld [vmem:[%s5156_s3 + $0x18] sm:$0xff]  ;;  %v4344_v7 = vld [vmem:[%s5156_s3 + $0x20] sm:$0xff]  ;;  %v4349_v8 = vld [vmem:[%s5156_s3 + $0x28] sm:$0xff] }
   0xf   :  { %v88_v6 = vpack.c.bf16 %v4337_v5, %v4330_v3  ;;  %v4354_v9 = vld [vmem:[%s5157_s25] sm:$0xff]   ;;  %v89_v10 = vpack.c.bf16 %v4349_v8, %v4344_v7  ;;  %v4361_v11 = vld [vmem:[%s5157_s25 + $0x10] sm:$0xff]   ;;  %v4371_v13 = vld [vmem:[%s5156_s3 + $0x38] sm:$0xff] }
  0x10   :  { %3403 = vmatprep.subr.bf16.mxu0 %v87_v4  ;;  %4067 = vmatprep.subr.bf16.mxu1 %v87_v4  ;;  %v4366_v12 = vld [vmem:[%s5156_s3 + $0x30] sm:$0xff] }
  0x11   :  { %3404 = vmatpush3.bf16.msra.mxu0 %v87_v4  ;;  %4071 = vmatpush3.bf16.msra.mxu1 %v87_v4 }
  0x12   :  { %3405 = vmatprep.subr.bf16.mxu0 %v88_v6  ;;  %4068 = vmatprep.subr.bf16.mxu1 %v88_v6 }
  0x13   :  { %3411 = vmatprep.mubr.msk.bf16.mxu0 %vm111_vm0, %v4354_v9  ;;  %3415 = vmatprep.mubr.msk.bf16.mxu1 %vm111_vm0, %v4361_v11 }
  0x15   :  { %3406 = vmatpush3.bf16.msra.mxu0 %v88_v6  ;;  %4072 = vmatpush3.bf16.msra.mxu1 %v88_v6 }
  0x16   :  { %30 = vsyncpa [#allocation6], 0  ;;  %3407 = vmatprep.subr.bf16.mxu0 %v89_v10  ;;  %v90_v14 = vpack.c.bf16 %v4371_v13, %v4366_v12  ;;  %4069 = vmatprep.subr.bf16.mxu1 %v89_v10  ;;  %s5158_s5 = sld [smem:[#allocation12_spill]]  ;;  %v506_v17 = vld [vmem:[%s5130_s7] sm:$0xff]  ;;  %v507_v18 = vld [vmem:[%s5130_s7 + $0x8] sm:$0xff]  ;;  %s5159_s26 = sld [smem:[#allocation14_spill]] }
  0x17   :  { %v3881_v20 = vpack.c.bf16 %v507_v18, %v506_v17  ;;  %v4394_v21 = vld [vmem:[%s5157_s25 + $0x8] sm:$0xff]   ;;  %v4399_v22 = vld [vmem:[%s5157_s25 + $0x18] sm:$0xff]   ;;  %v508_v25 = vld [vmem:[%s5130_s7 + $0x10] sm:$0xff]  ;;  %vm217_vm1 = vcmask 261120   ;;  %s5160_s3 = sld [smem:[#allocation13_spill]]  ;;  %s4195_s2 = smov 32  }
  0x18   :  { %v509_v27 = vld [vmem:[%s5130_s7 + $0x18] sm:$0xff]  ;;  %v511_v57 = vld [vmem:[%s5132_s9] sm:$0xff]  ;;  %v512_v58 = vld [vmem:[%s5132_s9 + $0x8] sm:$0xff]  ;;  %s4196_s30 = smov 96   ;;  %vm4199_vm2 = vmmov 0   ;;  %s5161_s4 = sld [smem:[#allocation11_spill]] }
  0x19   :  { %3408 = vmatpush3.bf16.msra.mxu0 %v89_v10  ;;  %4073 = vmatpush3.bf16.msra.mxu1 %v89_v10  ;;  %v3885_v28 = vpack.c.bf16 %v509_v27, %v508_v25  ;;  %v3889_v59 = vpack.c.bf16 %v512_v58, %v511_v57  ;;  %v513_v10 = vld [vmem:[%s5132_s9 + $0x10] sm:$0xff]  ;;  %v516_v27 = vld [vmem:[%s5132_s9 + $0x28] sm:$0xff]  ;;  %vm2640_vm15 = vcmask 519168   ;;  %s4203_s22 = smov [#allocation5]  }
  0x1a   :  { %3409 = vmatprep.subr.bf16.mxu0 %v90_v14  ;;  %4070 = vmatprep.subr.bf16.mxu1 %v90_v14  ;;  %s2939_s23 = sshll.u32 %s4203_s22, 4  ;;  %s2940_s23 = int_to_ptr.vmem [resolvable:$true] %s2939_s23 }
  0x1c   :  { %v197_v15 = vld [vmem:[%s5158_s5] sm:$0xff]  ;;  %v198_v16 = vld [vmem:[%s5158_s5 + $0x8] sm:$0xff]  ;;  %v199_v23 = vld [vmem:[%s5158_s5 + $0x10] sm:$0xff] }
  0x1d   :  { %v3857_v19 = vpack.c.bf16 %v198_v16, %v197_v15  ;;  %3410 = vmatpush3.bf16.msra.mxu0 %v90_v14  ;;  %4074 = vmatpush3.bf16.msra.mxu1 %v90_v14  ;;  %v200_v24 = vld [vmem:[%s5158_s5 + $0x18] sm:$0xff]  ;;  %v202_v29 = vld [vmem:[%s5159_s26] sm:$0xff]  ;;  %v203_v30 = vld [vmem:[%s5159_s26 + $0x8] sm:$0xff] }
  0x1e   :  { %3882 = vmatprep.subr.bf16.mxu0 %v3881_v20  ;;  %v3861_v26 = vpack.c.bf16 %v200_v24, %v199_v23  ;;  %v3865_v31 = vpack.c.bf16 %v203_v30, %v202_v29  ;;  %v204_v39 = vld [vmem:[%s5159_s26 + $0x10] sm:$0xff]  ;;  %v205_v40 = vld [vmem:[%s5159_s26 + $0x18] sm:$0xff]  ;;  %v206_v46 = vld [vmem:[%s5159_s26 + $0x20] sm:$0xff] }
  0x1f   :  { %3858 = vmatprep.subr.bf16.mxu1 %v3857_v19  ;;  %v3869_v45 = vpack.c.bf16 %v205_v40, %v204_v39  ;;  %v207_v47 = vld [vmem:[%s5159_s26 + $0x28] sm:$0xff]  ;;  %v208_v54 = vld [vmem:[%s5159_s26 + $0x30] sm:$0xff]  ;;  %v209_v55 = vld [vmem:[%s5159_s26 + $0x38] sm:$0xff] }
  0x20   :  { %3412 = vmatmul.mubr.msk.bf16.vlgmr.msra.gmra.mrb[0].mxu0 %vm111_vm0, %v4394_v21  ;;  %3416 = vmatmul.mubr.msk.bf16.vlgmr.msra.gmra.mrb[0].mxu1 %vm111_vm0, %v4399_v22  ;;  %v3873_v50 = vpack.c.bf16 %v207_v47, %v206_v46  ;;  %v3877_v56 = vpack.c.bf16 %v209_v55, %v208_v54  ;;  %v2961_v60 = vld [vmem:[%s5160_s3] ss:$0 sm:$0xff]  ;;  %v514_v14 = vld [vmem:[%s5132_s9 + $0x18] sm:$0xff] }
  0x21   :  { %3860 = vmatpush3.bf16.msra.mxu1 %v3857_v19  ;;  %3884 = vmatpush3.bf16.msra.mxu0 %v3881_v20  ;;  %v3893_v24 = vpack.c.bf16 %v514_v14, %v513_v10  ;;  %v2979_v39 = vld [vmem:[%s5131_s8] ss:$0 sm:$0xff] }
  0x22   :  { %3862 = vmatprep.subr.bf16.mxu1 %v3861_v26  ;;  %3886 = vmatprep.subr.bf16.mxu0 %v3885_v28 }
  0x25   :  { %3864 = vmatpush3.bf16.msra.mxu1 %v3861_v26  ;;  %3888 = vmatpush3.bf16.msra.mxu0 %v3885_v28  ;;  %v515_v26 = vld [vmem:[%s5132_s9 + $0x20] sm:$0xff] }
  0x26   :  { %3866 = vmatprep.subr.bf16.mxu1 %v3865_v31 }
  0xf3   :  { %v3413_v32 = vpop.f32.mrb[0].mxu0  ;;  %v3417_v33 = vpop.f32.mrb[0].mxu1 }
  0xf4   :  { %v158_v34 = vpop.f32.mrb[1].mxu0  ;;  %v174_v35 = vpop.f32.mrb[1].mxu1  ;;  %v191_v44 = vadd.f32 %v3413_v32, %v4330_v3  ;;  %v195_v52 = vadd.f32 %v3417_v33, %v4366_v12 }
  0xf5   :  { %v189_v36 = vadd.f32 %v158_v34, %v4320_v1  ;;  %v3414_v37 = vpop.f32.mrb[2].mxu0  ;;  %v3418_v38 = vpop.f32.mrb[2].mxu1  ;;  %v193_v48 = vadd.f32 %v174_v35, %v4344_v7  ;;  %v3897_v35 = vpack.c.bf16 %v516_v27, %v515_v26 }
  0xf6   :  { %v161_v41 = vpop.f32.mrb[3].mxu0  ;;  %v177_v42 = vpop.f32.mrb[3].mxu1  ;;  %v192_v49 = vadd.f32 %v3414_v37, %v4337_v5  ;;  %v196_v53 = vadd.f32 %v3418_v38, %v4371_v13  ;;  %v517_v37 = vld [vmem:[%s5132_s9 + $0x30] sm:$0xff]  ;;  %v518_v38 = vld [vmem:[%s5132_s9 + $0x38] sm:$0xff] }
  0xf7   :  { %v190_v43 = vadd.f32 %v161_v41, %v4325_v2  ;;  %3427 = vmatprep.mubr.msk.f32.mxu1 %vm217_vm1, %v189_v36  ;;  %3475 = vmatprep.mubr.msk.f32.mxu0 %vm217_vm1, %v189_v36  ;;  %v194_v51 = vadd.f32 %v177_v42, %v4349_v8  ;;  %v3901_v47 = vpack.c.bf16 %v518_v38, %v517_v37 }
  0xf9   :  { %3428 = vmatmul.mubr.msk.f32.vlgmr.msra.gmra.mrb[4].mxu1 %vm217_vm1, %v190_v43  ;;  %3476 = vmatmul.mubr.msk.f32.vlgmr.msra.gmra.mrb[4].mxu0 %vm217_vm1, %v190_v43 }
  0xfa   :  { %3430 = vmatprep.mubr.msk.f32.mxu1 %vm217_vm1, %v191_v44  ;;  %3478 = vmatprep.mubr.msk.f32.mxu0 %vm217_vm1, %v191_v44 }
  0xfb   :  { %3868 = vmatpush3.bf16.msra.mxu1 %v3865_v31 }
  0xfc   :  { %3870 = vmatprep.subr.bf16.mxu1 %v3869_v45 }
  0xfd   :  { %3431 = vmatmul.mubr.msk.f32.gmra.mrb[6].mxu1 %vm217_vm1, %v192_v49  ;;  %3479 = vmatmul.mubr.msk.f32.gmra.mrb[6].mxu0 %vm217_vm1, %v192_v49 }
  0xfe   :  { %3433 = vmatprep.mubr.msk.f32.mxu1 %vm217_vm1, %v193_v48  ;;  %3481 = vmatprep.mubr.msk.f32.mxu0 %vm217_vm1, %v193_v48 }
  0xff   :  { %3872 = vmatpush3.bf16.msra.mxu1 %v3869_v45 }
 0x100   :  { %3874 = vmatprep.subr.bf16.mxu1 %v3873_v50 }
 0x101   :  { %3434 = vmatmul.mubr.msk.f32.gmra.mrb[8].mxu1 %vm217_vm1, %v194_v51  ;;  %3482 = vmatmul.mubr.msk.f32.gmra.mrb[8].mxu0 %vm217_vm1, %v194_v51 }
 0x102   :  { %3436 = vmatprep.mubr.msk.f32.mxu1 %vm217_vm1, %v195_v52  ;;  %3484 = vmatprep.mubr.msk.f32.mxu0 %vm217_vm1, %v195_v52 }
 0x103   :  { %3876 = vmatpush3.bf16.msra.mxu1 %v3873_v50 }
 0x104   :  { %3878 = vmatprep.subr.bf16.mxu1 %v3877_v56 }
 0x105   :  { %3437 = vmatmul.mubr.msk.f32.gmra.mrb[10].mxu1 %vm217_vm1, %v196_v53  ;;  %3485 = vmatmul.mubr.msk.f32.gmra.mrb[10].mxu0 %vm217_vm1, %v196_v53 }
 0x106   :  { %3523 = vmatprep.mubr.msk.bf16.mxu0 %vm111_vm0, %v4354_v9 }
 0x107   :  { %3880 = vmatpush3.bf16.msra.mxu1 %v3877_v56 }
 0x108   :  { %3890 = vmatprep.subr.bf16.mxu1 %v3889_v59 }
 0x1cc   :  { %v3429_v61 = vpop.f32.mrb[4].mxu1  ;;  %v3477_v62 = vpop.f32.mrb[4].mxu0 }
 0x1cd   :  { %v314_v63 = vadd.f32 %v3429_v61, %v2961_v60  ;;  %v308_v0 = vpop.f32.mrb[5].mxu1  ;;  %v592_v4 = vpop.f32.mrb[5].mxu0  ;;  %v598_v51 = vadd.f32 %v3477_v62, %v2979_v39 }
 0x1ce   :  { %v309_v6 = vadd.f32 %v2961_v60, %v308_v0  ;;  %v593_v48 = vadd.f32 %v2979_v39, %v592_v4 }
 0x1cf   :  { %v348_v18 = vmax.f32 %v314_v63, 0.0  ;;  %v632_v55 = vmax.f32 %v598_v51, 0.0 }
 0x1d0   :  { %v347_v15 = vmax.f32 %v309_v6, 0.0  ;;  %v3432_v16 = vpop.f32.mrb[6].mxu1  ;;  %v3480_v17 = vpop.f32.mrb[6].mxu0  ;;  %v631_v53 = vmax.f32 %v593_v48, 0.0 }
 0x1d1   :  { %v324_v19 = vadd.f32 %v3432_v16, %v2961_v60  ;;  %v318_v20 = vpop.f32.mrb[7].mxu1  ;;  %v602_v23 = vpop.f32.mrb[7].mxu0  ;;  %v608_v56 = vadd.f32 %v3480_v17, %v2979_v39 }
 0x1d2   :  { %v319_v25 = vadd.f32 %v2961_v60, %v318_v20  ;;  %3455 = vmatprep.mubr.msk.f32.mxu1 %vm111_vm0, %v347_v15  ;;  %v603_v54 = vadd.f32 %v2979_v39, %v602_v23  ;;  %v2988_v23 = vld [vmem:[%s5133_s10] ss:$0 sm:$0xff] }
 0x1d3   :  { %3456 = vmatmul.mubr.msk.f32.vlgmr.msra.gmra.mrb[12].mxu1 %vm111_vm0, %v348_v18  ;;  %v350_v31 = vmax.f32 %v324_v19, 0.0 }
 0x1d4   :  { %v349_v28 = vmax.f32 %v319_v25, 0.0  ;;  %v3435_v29 = vpop.f32.mrb[8].mxu1  ;;  %v3483_v30 = vpop.f32.mrb[8].mxu0  ;;  %3892 = vmatpush3.bf16.msra.mxu1 %v3889_v59  ;;  %v633_v57 = vmax.f32 %v603_v54, 0.0  ;;  %v634_v59 = vmax.f32 %v608_v56, 0.0 }
 0x1d5   :  { %v334_v32 = vadd.f32 %v3435_v29, %v2961_v60  ;;  %v328_v33 = vpop.f32.mrb[9].mxu1  ;;  %v612_v34 = vpop.f32.mrb[9].mxu0  ;;  %3894 = vmatprep.subr.bf16.mxu1 %v3893_v24 }
 0x1d6   :  { %v329_v36 = vadd.f32 %v2961_v60, %v328_v33  ;;  %3458 = vmatprep.mubr.msk.f32.mxu1 %vm111_vm0, %v349_v28  ;;  %v613_v58 = vadd.f32 %v2979_v39, %v612_v34 }
 0x1d7   :  { %3459 = vmatmul.mubr.msk.f32.gmra.mrb[14].mxu1 %vm111_vm0, %v350_v31  ;;  %v352_v43 = vmax.f32 %v334_v32, 0.0 }
 0x1d8   :  { %v351_v40 = vmax.f32 %v329_v36, 0.0  ;;  %v3438_v41 = vpop.f32.mrb[10].mxu1  ;;  %v3486_v42 = vpop.f32.mrb[10].mxu0  ;;  %3896 = vmatpush3.bf16.msra.mxu1 %v3893_v24  ;;  %v635_v61 = vmax.f32 %v613_v58, 0.0 }
 0x1d9   :  { %v344_v44 = vadd.f32 %v3438_v41, %v2961_v60  ;;  %v338_v45 = vpop.f32.mrb[11].mxu1  ;;  %v622_v46 = vpop.f32.mrb[11].mxu0  ;;  %3898 = vmatprep.subr.bf16.mxu1 %v3897_v35  ;;  %v628_v0 = vadd.f32 %v3486_v42, %v2979_v39 }
 0x1da   :  { %v339_v49 = vadd.f32 %v2961_v60, %v338_v45  ;;  %3461 = vmatprep.mubr.msk.f32.mxu1 %vm111_vm0, %v351_v40  ;;  %v618_v60 = vadd.f32 %v3483_v30, %v2979_v39  ;;  %v623_v62 = vadd.f32 %v2979_v39, %v622_v46 }
 0x1db   :  { %3462 = vmatmul.mubr.msk.f32.gmra.mrb[16].mxu1 %vm111_vm0, %v352_v43  ;;  %v354_v52 = vmax.f32 %v344_v44, 0.0  ;;  %v638_v6 = vmax.f32 %v628_v0, 0.0  ;;  %v3004_v0 = vld [vmem:[%s5158_s5 + $0x38] sm:$0xff] }
 0x1dc   :  { %v353_v50 = vmax.f32 %v339_v49, 0.0  ;;  %3900 = vmatpush3.bf16.msra.mxu1 %v3897_v35  ;;  %v636_v63 = vmax.f32 %v618_v60, 0.0  ;;  %v637_v4 = vmax.f32 %v623_v62, 0.0  ;;  %v3001_v60 = vld [vmem:[%s5158_s5 + $0x20] sm:$0xff]  ;;  %v3003_v62 = vld [vmem:[%s5158_s5 + $0x30] sm:$0xff] }
 0x1dd   :  { %3902 = vmatprep.subr.bf16.mxu1 %v3901_v47 }
 0x1de   :  { %3464 = vmatprep.mubr.msk.f32.mxu1 %vm111_vm0, %v353_v50 }
 0x1df   :  { %3465 = vmatmul.mubr.msk.f32.gmra.mrb[18].mxu1 %vm111_vm0, %v354_v52 }
 0x1e0   :  { %3904 = vmatpush3.bf16.msra.mxu1 %v3901_v47  ;;  %3503 = vmatprep.mubr.msk.f32.mxu1 %vm111_vm0, %v631_v53 }
 0x1e3   :  { %3504 = vmatmul.mubr.msk.f32.vlgmr.msra.gmra.mrb[20].mxu1 %vm111_vm0, %v632_v55 }
 0x1e4   :  { %3506 = vmatprep.mubr.msk.f32.mxu1 %vm111_vm0, %v633_v57 }
 0x1e7   :  { %3507 = vmatmul.mubr.msk.f32.gmra.mrb[22].mxu1 %vm111_vm0, %v634_v59 }
 0x1e8   :  { %3509 = vmatprep.mubr.msk.f32.mxu1 %vm111_vm0, %v635_v61  ;;  %v3002_v61 = vld [vmem:[%s5158_s5 + $0x28] sm:$0xff] }
 0x1eb   :  { %3510 = vmatmul.mubr.msk.f32.gmra.mrb[24].mxu1 %vm111_vm0, %v636_v63  ;;  %v3905_v63 = vpack.c.bf16 %v3002_v61, %v3001_v60 }
 0x1ec   :  { %3512 = vmatprep.mubr.msk.f32.mxu1 %vm111_vm0, %v637_v4  ;;  %v3909_v4 = vpack.c.bf16 %v3004_v0, %v3003_v62 }
 0x1ed   :  { %3906 = vmatprep.subr.bf16.mxu1 %v3905_v63 }
 0x1ee   :  { %3908 = vmatpush3.bf16.msra.mxu1 %v3905_v63 }
 0x1ef   :  { %3513 = vmatmul.mubr.msk.f32.gmra.mrb[26].mxu1 %vm111_vm0, %v638_v6  ;;  %3910 = vmatprep.subr.bf16.mxu1 %v3909_v4  ;;  %v2970_v6 = vld [vmem:[%s5129_s6] ss:$0 sm:$0xff] }
 0x1f2   :  { %3912 = vmatpush3.bf16.msra.mxu1 %v3909_v4 }
 0x2a6   :  { %v3457_v10 = vpop.f32.mrb[12].mxu1 }
 0x2a7   :  { %v451_v14 = vpop.f32.mrb[13].mxu1 }
 0x2aa   :  { %v3460_v15 = vpop.f32.mrb[14].mxu1 }
 0x2ab   :  { %v461_v16 = vpop.f32.mrb[15].mxu1 }
 0x2ae   :  { %v4513_v17 = vpop.f32.mrb[16].mxu1 }
 0x2af   :  { %v4515_v18 = vpop.f32.mrb[17].mxu1 }
 0x2b2   :  { %v4517_v19 = vpop.f32.mrb[18].mxu1 }
 0x2b3   :  { %v4519_v20 = vpop.f32.mrb[19].mxu1 }
 0x2b6   :  { %v3505_v24 = vpop.f32.mrb[20].mxu1 }
 0x2b7   :  { %v741_v25 = vadd.f32 %v3505_v24, %v2988_v23  ;;  %v735_v26 = vpop.f32.mrb[21].mxu1  ;;  %v452_v24 = vadd.f32 %v2970_v6, %v451_v14 }
 0x2b8   :  { %v736_v27 = vadd.f32 %v2988_v23, %v735_v26  ;;  %v462_v26 = vadd.f32 %v2970_v6, %v461_v16 }
 0x2b9   :  { %v775_v28 = vmax.f32 %v741_v25, 0.0  ;;  %v467_v25 = vadd.f32 %v3460_v15, %v2970_v6 }
 0x2ba   :  { %v774_v29 = vmax.f32 %v736_v27, 0.0  ;;  %v3508_v30 = vpop.f32.mrb[22].mxu1 }
 0x2bb   :  { %v4525_v31 = vadd.f32 %v775_v28, %v4325_v2  ;;  %v751_v32 = vadd.f32 %v3508_v30, %v2988_v23  ;;  %v745_v33 = vpop.f32.mrb[23].mxu1  ;;  %v490_v28 = vmax.f32 %v452_v24, 0.0  ;;  %v492_v30 = vmax.f32 %v462_v26, 0.0  ;;  %v3035_v24 = vld [vmem:[%s5130_s7 + $0x30] sm:$0xff] }
 0x2bc   :  { %v4528_v34 = vadd.f32 %v774_v29, %v4320_v1  ;;  %v746_v35 = vadd.f32 %v2988_v23, %v745_v33  ;;  %v493_v29 = vmax.f32 %v467_v25, 0.0  ;;  %v472_v33 = vadd.f32 %v2970_v6, %v4515_v18 }
 0x2bd   :  { %v777_v36 = vmax.f32 %v751_v32, 0.0  ;;  %v477_v32 = vadd.f32 %v4513_v17, %v2970_v6  ;;  %v4587_v17 = vadd.f32 %v492_v30, %v4330_v3 }
 0x2be   :  { %v776_v37 = vmax.f32 %v746_v35, 0.0  ;;  %v3511_v38 = vpop.f32.mrb[24].mxu1  ;;  %v4084_v39 = vpack.i.bf16 %v4525_v31, %v4528_v34  ;;  %v4580_v14 = vadd.f32 %v493_v29, %v4337_v5 }
 0x2bf   :  { %v4533_v40 = vadd.f32 %v777_v36, %v4337_v5  ;;  %v761_v41 = vadd.f32 %v3511_v38, %v2988_v23  ;;  %v755_v42 = vpop.f32.mrb[25].mxu1  ;;  %v495_v18 = vmax.f32 %v477_v32, 0.0  ;;  %v3006_v32 = vld [vmem:[%s5159_s26 + $0x40] sm:$0xff] }
 0x2c0   :  { %v4536_v43 = vadd.f32 %v776_v37, %v4330_v3  ;;  %v756_v44 = vadd.f32 %v2988_v23, %v755_v42  ;;  %4085 = vrot.lane.b32.xlu0 %v4084_v39, %s4195_s2  ;;  %v4577_v37 = vadd.f32 %v490_v28, %v4320_v1  ;;  %v487_v1 = vadd.f32 %v4517_v19, %v2970_v6 }
 0x2c1   :  { %v779_v45 = vmax.f32 %v761_v41, 0.0  ;;  %v482_v42 = vadd.f32 %v2970_v6, %v4519_v20  ;;  %v4596_v3 = vadd.f32 %v495_v18, %v4349_v8 }
 0x2c2   :  { %v778_v46 = vmax.f32 %v756_v44, 0.0  ;;  %v3514_v47 = vpop.f32.mrb[26].mxu1  ;;  %v4089_v48 = vpack.i.bf16 %v4533_v40, %v4536_v43 }
 0x2c3   :  { %v4541_v49 = vadd.f32 %v779_v45, %v4349_v8  ;;  %v771_v50 = vadd.f32 %v3514_v47, %v2988_v23  ;;  %v765_v51 = vpop.f32.mrb[27].mxu1  ;;  %v496_v20 = vmax.f32 %v482_v42, 0.0 }
 0x2c4   :  { %v4544_v52 = vadd.f32 %v778_v46, %v4344_v7  ;;  %v766_v53 = vadd.f32 %v2988_v23, %v765_v51  ;;  %4090 = vrot.lane.b32.xlu0 %v4089_v48, %s4195_s2  ;;  %v457_v23 = vadd.f32 %v3457_v10, %v2970_v6 }
 0x2c5   :  { %v781_v54 = vmax.f32 %v771_v50, 0.0  ;;  %v497_v50 = vmax.f32 %v487_v1, 0.0 }
 0x2c6   :  { %v780_v55 = vmax.f32 %v766_v53, 0.0  ;;  %v4094_v56 = vpack.i.bf16 %v4541_v49, %v4544_v52  ;;  %v491_v27 = vmax.f32 %v457_v23, 0.0 }
 0x2c7   :  { %v4549_v57 = vadd.f32 %v781_v54, %v4371_v13 }
 0x2c8   :  { %v4552_v58 = vadd.f32 %v780_v55, %v4366_v12  ;;  %4095 = vrot.lane.b32.xlu1 %v4094_v56, %s4195_s2  ;;  %v4574_v36 = vadd.f32 %v491_v27, %v4325_v2  ;;  %v494_v2 = vmax.f32 %v472_v33, 0.0  ;;  %v3007_v33 = vld [vmem:[%s5159_s26 + $0x48] sm:$0xff] }
 0x2ca   :  { %v4099_v59 = vpack.i.bf16 %v4549_v57, %v4552_v58  ;;  %v4599_v47 = vadd.f32 %v494_v2, %v4344_v7  ;;  %v4609_v7 = vadd.f32 %v496_v20, %v4366_v12  ;;  %v3033_v12 = vld [vmem:[%s5130_s7 + $0x20] sm:$0xff] }
 0x2cc   :  { %4100 = vrot.lane.b32.xlu1 %v4099_v59, %s4195_s2  ;;  %v4606_v59 = vadd.f32 %v497_v50, %v4371_v13  ;;  %v3034_v13 = vld [vmem:[%s5130_s7 + $0x28] sm:$0xff]  ;;  %v3013_v50 = vld [vmem:[%s5159_s26 + $0x78] sm:$0xff] }
 0x2cd   :  { %v3929_v4 = vpack.c.bf16 %v3034_v13, %v3033_v12 }
 0x2cf   :  { %3930 = vmatprep.subr.bf16.mxu1 %v3929_v4 }
 0x332   :  { %v4086_v35 = vpop.permute.xlu0 %4085 }
 0x333   :  { %v4088_v38 = vunpack.i.h.bf16 %v4086_v35  ;;  %v4087_v10 = vunpack.i.l.bf16 %v4086_v35  ;;  %v3913_v35 = vpack.c.bf16 %v3007_v33, %v3006_v32  ;;  %v3040_v32 = vld [vmem:[%s5132_s9 + $0x50] sm:$0xff]  ;;  %v3041_v33 = vld [vmem:[%s5132_s9 + $0x58] sm:$0xff] }
 0x335   :  { %v822_v15 = vsel %vm217_vm1, %v4577_v37, %v4087_v10  ;;  %v823_v16 = vsel %vm217_vm1, %v4574_v36, %v4088_v38  ;;  %v3008_v38 = vld [vmem:[%s5159_s26 + $0x50] sm:$0xff]  ;;  %v3009_v10 = vld [vmem:[%s5159_s26 + $0x58] sm:$0xff] }
 0x336   :  { %v4091_v39 = vpop.permute.xlu0 %4090  ;;  %v830_v41 = vpack.c.bf16 %v823_v16, %v822_v15  ;;  %v3917_v2 = vpack.c.bf16 %v3009_v10, %v3008_v38 }
 0x337   :  { %v4093_v44 = vunpack.i.h.bf16 %v4091_v39  ;;  %v4092_v5 = vunpack.i.l.bf16 %v4091_v39  ;;  %v3010_v39 = vld [vmem:[%s5159_s26 + $0x60] sm:$0xff] }
 0x338   :  { %3515 = vmatprep.subr.bf16.mxu0 %v830_v41 }
 0x339   :  { %3516 = vmatpush3.bf16.msra.mxu0 %v830_v41  ;;  %v824_v45 = vsel %vm217_vm1, %v4587_v17, %v4092_v5  ;;  %v825_v46 = vsel %vm217_vm1, %v4580_v14, %v4093_v44  ;;  %v3011_v41 = vld [vmem:[%s5159_s26 + $0x68] sm:$0xff] }
 0x33a   :  { %v4096_v48 = vpop.permute.xlu1 %4095  ;;  %v831_v19 = vpack.c.bf16 %v825_v46, %v824_v45  ;;  %v3921_v45 = vpack.c.bf16 %v3011_v41, %v3010_v39  ;;  %v3043_v39 = vld [vmem:[%s5132_s9 + $0x68] sm:$0xff] }
 0x33b   :  { %v4098_v51 = vunpack.i.h.bf16 %v4096_v48  ;;  %v4097_v53 = vunpack.i.l.bf16 %v4096_v48 }
 0x33c   :  { %3517 = vmatprep.subr.bf16.mxu0 %v831_v19 }
 0x33d   :  { %3518 = vmatpush3.bf16.msra.mxu0 %v831_v19  ;;  %v826_v54 = vsel %vm217_vm1, %v4599_v47, %v4097_v53  ;;  %v827_v55 = vsel %vm217_vm1, %v4596_v3, %v4098_v51  ;;  %v3012_v19 = vld [vmem:[%s5159_s26 + $0x70] sm:$0xff]  ;;  %v3038_v51 = vld [vmem:[%s5132_s9 + $0x40] sm:$0xff]  ;;  %v3039_v53 = vld [vmem:[%s5132_s9 + $0x48] sm:$0xff] }
 0x33e   :  { %v4101_v56 = vpop.permute.xlu1 %4100  ;;  %v832_v8 = vpack.c.bf16 %v827_v55, %v826_v54  ;;  %v3925_v20 = vpack.c.bf16 %v3013_v50, %v3012_v19  ;;  %v3937_v54 = vpack.c.bf16 %v3039_v53, %v3038_v51  ;;  %v3045_v19 = vld [vmem:[%s5132_s9 + $0x78] sm:$0xff] }
 0x33f   :  { %v4103_v60 = vunpack.i.h.bf16 %v4101_v56  ;;  %v4102_v61 = vunpack.i.l.bf16 %v4101_v56 }
 0x340   :  { %3519 = vmatprep.subr.bf16.mxu0 %v832_v8 }
 0x341   :  { %3520 = vmatpush3.bf16.msra.mxu0 %v832_v8  ;;  %v828_v62 = vsel %vm217_vm1, %v4609_v7, %v4102_v61  ;;  %v829_v63 = vsel %vm217_vm1, %v4606_v59, %v4103_v60 }
 0x342   :  { %v833_v0 = vpack.c.bf16 %v829_v63, %v828_v62 }
 0x344   :  { %3521 = vmatprep.subr.bf16.mxu0 %v833_v0 }
 0x345   :  { %3522 = vmatpush3.bf16.msra.mxu0 %v833_v0 }
 0x346   :  { %3914 = vmatprep.subr.bf16.mxu0 %v3913_v35 }
 0x348   :  { %3524 = vmatmul.mubr.msk.bf16.vlgmr.msra.gmra.mrb[12].mxu0 %vm111_vm0, %v4394_v21 }
 0x349   :  { %3527 = vmatprep.mubr.msk.bf16.mxu0 %vm111_vm0, %v4361_v11  ;;  %v3036_v11 = vld [vmem:[%s5130_s7 + $0x38] sm:$0xff]  ;;  %3916 = vmatpush3.bf16.msra.mxu0 %v3913_v35 }
 0x34a   :  { %v3933_v29 = vpack.c.bf16 %v3036_v11, %v3035_v24  ;;  %3918 = vmatprep.subr.bf16.mxu0 %v3917_v2 }
 0x34d   :  { %3920 = vmatpush3.bf16.msra.mxu0 %v3917_v2  ;;  %v3042_v2 = vld [vmem:[%s5132_s9 + $0x60] sm:$0xff] }
 0x34e   :  { %3922 = vmatprep.subr.bf16.mxu0 %v3921_v45 }
 0x350   :  { %3528 = vmatmul.mubr.msk.bf16.gmra.mrb[16].mxu0 %vm111_vm0, %v4399_v22 }
 0x351   :  { %3924 = vmatpush3.bf16.msra.mxu0 %v3921_v45  ;;  %v3945_v45 = vpack.c.bf16 %v3043_v39, %v3042_v2 }
 0x352   :  { %3926 = vmatprep.subr.bf16.mxu0 %v3925_v20 }
 0x355   :  { %3928 = vmatpush3.bf16.msra.mxu0 %v3925_v20 }
 0x356   :  { %3938 = vmatprep.subr.bf16.mxu0 %v3937_v54 }
 0x41b   :  { %v3525_v6 = vpop.f32.mrb[12].mxu0 }
 0x41c   :  { %v868_v23 = vpop.f32.mrb[13].mxu0  ;;  %v901_v30 = vadd.f32 %v3525_v6, %v4587_v17 }
 0x41d   :  { %v899_v25 = vadd.f32 %v868_v23, %v4577_v37  ;;  %1227 = vrot.lane.b32.xlu0 %v868_v23, %s4196_s30  ;;  %v3526_v26 = vpop.f32.mrb[14].mxu0 }
 0x41e   :  { %v871_v27 = vpop.f32.mrb[15].mxu0  ;;  %v902_v15 = vadd.f32 %v3526_v26, %v4580_v14 }
 0x41f   :  { %v900_v28 = vadd.f32 %v871_v27, %v4574_v36  ;;  %3539 = vmatprep.mubr.msk.f32.mxu1 %vm217_vm1, %v899_v25  ;;  %1229 = vrot.lane.b32.xlu1 %v871_v27, %s4196_s30 }
 0x421   :  { %1231 = vrot.lane.b32.xlu0 %v3525_v6, %s4196_s30  ;;  %3540 = vmatmul.mubr.msk.f32.vlgmr.msra.gmra.mrb[28].mxu1 %vm217_vm1, %v900_v28 }
 0x422   :  { %3542 = vmatprep.mubr.msk.f32.mxu1 %vm217_vm1, %v901_v30  ;;  %3932 = vmatpush3.bf16.msra.mxu1 %v3929_v4 }
 0x423   :  { %1233 = vrot.lane.b32.xlu1 %v3526_v26, %s4196_s30  ;;  %v3529_v16 = vpop.f32.mrb[16].mxu0  ;;  %3934 = vmatprep.subr.bf16.mxu1 %v3933_v29  ;;  %v3015_v26 = vld [vmem:[%s5160_s3 + $0x1] ss:$0 sm:$0xff] }
 0x424   :  { %v884_v18 = vpop.f32.mrb[17].mxu0  ;;  %v905_v46 = vadd.f32 %v3529_v16, %v4609_v7 }
 0x425   :  { %v903_v1 = vadd.f32 %v884_v18, %v4599_v47  ;;  %3543 = vmatmul.mubr.msk.f32.gmra.mrb[30].mxu1 %vm217_vm1, %v902_v15  ;;  %1235 = vrot.lane.b32.xlu0 %v884_v18, %s4196_s30  ;;  %v3530_v42 = vpop.f32.mrb[18].mxu0 }
 0x426   :  { %v887_v44 = vpop.f32.mrb[19].mxu0  ;;  %3936 = vmatpush3.bf16.msra.mxu1 %v3933_v29  ;;  %v906_v48 = vadd.f32 %v3530_v42, %v4606_v59 }
 0x427   :  { %v904_v5 = vadd.f32 %v887_v44, %v4596_v3  ;;  %3545 = vmatprep.mubr.msk.f32.mxu1 %vm217_vm1, %v903_v1  ;;  %1237 = vrot.lane.b32.xlu1 %v887_v44, %s4196_s30 }
 0x429   :  { %1239 = vrot.lane.b32.xlu0 %v3529_v16, %s4196_s30  ;;  %3546 = vmatmul.mubr.msk.f32.gmra.mrb[32].mxu1 %vm217_vm1, %v904_v5  ;;  %v3941_v16 = vpack.c.bf16 %v3041_v33, %v3040_v32 }
 0x42a   :  { %3548 = vmatprep.mubr.msk.f32.mxu1 %vm217_vm1, %v905_v46 }
 0x42b   :  { %1241 = vrot.lane.b32.xlu1 %v3530_v42, %s4196_s30 }
 0x42d   :  { %3549 = vmatmul.mubr.msk.f32.gmra.mrb[34].mxu1 %vm217_vm1, %v906_v48  ;;  %v3044_v48 = vld [vmem:[%s5132_s9 + $0x70] sm:$0xff] }
 0x48f   :  { %v1228_v55 = vpop.permute.xlu0 %1227 }
 0x490   :  { %v1251_v56 = vadd.f32 %v1228_v55, %v4528_v34  ;;  %v3949_v55 = vpack.c.bf16 %v3045_v19, %v3044_v48 }
 0x491   :  { %v1230_v8 = vpop.permute.xlu1 %1229 }
 0x492   :  { %v1252_v60 = vadd.f32 %v1230_v8, %v4525_v31  ;;  %3587 = vmatprep.mubr.msk.f32.mxu1 %vm217_vm1, %v1251_v56 }
 0x493   :  { %v1232_v61 = vpop.permute.xlu0 %1231 }
 0x494   :  { %v1253_v62 = vadd.f32 %v1232_v61, %v4536_v43  ;;  %3588 = vmatmul.mubr.msk.f32.vlgmr.msra.gmra.mrb[36].mxu1 %vm217_vm1, %v1252_v60  ;;  %v3047_v61 = vld [vmem:[%s5131_s8 + $0x1] ss:$0 sm:$0xff] }
 0x495   :  { %v1234_v63 = vpop.permute.xlu1 %1233 }
 0x496   :  { %v1254_v0 = vadd.f32 %v1234_v63, %v4533_v40  ;;  %3590 = vmatprep.mubr.msk.f32.mxu1 %vm217_vm1, %v1253_v62 }
 0x497   :  { %v1236_v12 = vpop.permute.xlu0 %1235 }
 0x498   :  { %v1255_v13 = vadd.f32 %v1236_v12, %v4544_v52  ;;  %3591 = vmatmul.mubr.msk.f32.gmra.mrb[38].mxu1 %vm217_vm1, %v1254_v0 }
 0x499   :  { %v1238_v4 = vpop.permute.xlu1 %1237 }
 0x49a   :  { %v1256_v6 = vadd.f32 %v1238_v4, %v4541_v49  ;;  %3593 = vmatprep.mubr.msk.f32.mxu1 %vm217_vm1, %v1255_v13 }
 0x49b   :  { %v1240_v23 = vpop.permute.xlu0 %1239 }
 0x49c   :  { %v1257_v24 = vadd.f32 %v1240_v23, %v4552_v58  ;;  %3594 = vmatmul.mubr.msk.f32.gmra.mrb[40].mxu1 %vm217_vm1, %v1256_v6 }
 0x49d   :  { %v1242_v11 = vpop.permute.xlu1 %1241 }
 0x49e   :  { %v1258_v25 = vadd.f32 %v1242_v11, %v4549_v57  ;;  %3596 = vmatprep.mubr.msk.f32.mxu1 %vm217_vm1, %v1257_v24 }
 0x4a0   :  { %3597 = vmatmul.mubr.msk.f32.gmra.mrb[42].mxu1 %vm217_vm1, %v1258_v25 }
 0x4a1   :  { %3635 = vmatprep.mubr.msk.bf16.mxu1 %vm111_vm0, %v4354_v9 }
 0x4f4   :  { %v3541_v27 = vpop.f32.mrb[28].mxu1 }
 0x4f5   :  { %v1027_v28 = vadd.f32 %v3541_v27, %v3015_v26  ;;  %v1021_v29 = vpop.f32.mrb[29].mxu1 }
 0x4f6   :  { %v1022_v30 = vadd.f32 %v3015_v26, %v1021_v29 }
 0x4f7   :  { %v1061_v10 = vmax.f32 %v1027_v28, 0.0 }
 0x4f8   :  { %v1060_v35 = vmax.f32 %v1022_v30, 0.0  ;;  %v3544_v38 = vpop.f32.mrb[30].mxu1 }
 0x4f9   :  { %v1037_v9 = vadd.f32 %v3544_v38, %v3015_v26  ;;  %v1031_v15 = vpop.f32.mrb[31].mxu1 }
 0x4fa   :  { %v1032_v18 = vadd.f32 %v3015_v26, %v1031_v15  ;;  %3567 = vmatprep.mubr.msk.f32.mxu0 %vm111_vm0, %v1060_v35 }
 0x4fb   :  { %3568 = vmatmul.mubr.msk.f32.vlgmr.msra.gmra.mrb[20].mxu0 %vm111_vm0, %v1061_v10  ;;  %v1063_v42 = vmax.f32 %v1037_v9, 0.0 }
 0x4fc   :  { %v1062_v41 = vmax.f32 %v1032_v18, 0.0  ;;  %v3547_v1 = vpop.f32.mrb[32].mxu1  ;;  %3940 = vmatpush3.bf16.msra.mxu0 %v3937_v54  ;;  %v3024_v18 = vld [vmem:[%s5129_s6 + $0x1] ss:$0 sm:$0xff] }
 0x4fd   :  { %v1047_v44 = vadd.f32 %v3547_v1, %v3015_v26  ;;  %v1041_v5 = vpop.f32.mrb[33].mxu1  ;;  %3942 = vmatprep.subr.bf16.mxu0 %v3941_v16 }
 0x4fe   :  { %v1042_v46 = vadd.f32 %v3015_v26, %v1041_v5  ;;  %3570 = vmatprep.mubr.msk.f32.mxu0 %vm111_vm0, %v1062_v41  ;;  %v3070_v5 = vld [vmem:[%s5158_s5 + $0x48] sm:$0xff] }
 0x4ff   :  { %3571 = vmatmul.mubr.msk.f32.gmra.mrb[22].mxu0 %vm111_vm0, %v1063_v42  ;;  %v1065_v51 = vmax.f32 %v1047_v44, 0.0  ;;  %v3069_v44 = vld [vmem:[%s5158_s5 + $0x40] sm:$0xff] }
 0x500   :  { %v1064_v50 = vmax.f32 %v1042_v46, 0.0  ;;  %v3550_v20 = vpop.f32.mrb[34].mxu1  ;;  %3944 = vmatpush3.bf16.msra.mxu0 %v3941_v16  ;;  %v3953_v19 = vpack.c.bf16 %v3070_v5, %v3069_v44  ;;  %v3079_v44 = vld [vmem:[%s5159_s26 + $0xa8] sm:$0xff] }
 0x501   :  { %v1057_v53 = vadd.f32 %v3550_v20, %v3015_v26  ;;  %v1051_v54 = vpop.f32.mrb[35].mxu1  ;;  %3946 = vmatprep.subr.bf16.mxu0 %v3945_v45 }
 0x502   :  { %v1052_v56 = vadd.f32 %v3015_v26, %v1051_v54  ;;  %3573 = vmatprep.mubr.msk.f32.mxu0 %vm111_vm0, %v1064_v50  ;;  %v3072_v50 = vld [vmem:[%s5158_s5 + $0x58] sm:$0xff] }
 0x503   :  { %3574 = vmatmul.mubr.msk.f32.gmra.mrb[24].mxu0 %vm111_vm0, %v1065_v51  ;;  %v1067_v60 = vmax.f32 %v1057_v53, 0.0 }
 0x504   :  { %v1066_v8 = vmax.f32 %v1052_v56, 0.0  ;;  %3948 = vmatpush3.bf16.msra.mxu0 %v3945_v45  ;;  %v3071_v45 = vld [vmem:[%s5158_s5 + $0x50] sm:$0xff] }
 0x505   :  { %3950 = vmatprep.subr.bf16.mxu0 %v3949_v55  ;;  %v3957_v54 = vpack.c.bf16 %v3072_v50, %v3071_v45 }
 0x506   :  { %3576 = vmatprep.mubr.msk.f32.mxu0 %vm111_vm0, %v1066_v8 }
 0x507   :  { %3577 = vmatmul.mubr.msk.f32.gmra.mrb[26].mxu0 %vm111_vm0, %v1067_v60 }
 0x508   :  { %3952 = vmatpush3.bf16.msra.mxu0 %v3949_v55 }
 0x509   :  { %3954 = vmatprep.subr.bf16.mxu0 %v3953_v19 }
 0x567   :  { %v3589_v62 = vpop.f32.mrb[36].mxu1 }
 0x568   :  { %v1379_v63 = vadd.f32 %v3589_v62, %v3047_v61  ;;  %v1373_v0 = vpop.f32.mrb[37].mxu1 }
 0x569   :  { %v1374_v12 = vadd.f32 %v3047_v61, %v1373_v0 }
 0x56a   :  { %v1413_v6 = vmax.f32 %v1379_v63, 0.0 }
 0x56b   :  { %v1412_v13 = vmax.f32 %v1374_v12, 0.0  ;;  %v3592_v4 = vpop.f32.mrb[38].mxu1 }
 0x56c   :  { %v1389_v23 = vadd.f32 %v3592_v4, %v3047_v61  ;;  %v1383_v24 = vpop.f32.mrb[39].mxu1 }
 0x56d   :  { %v1384_v11 = vadd.f32 %v3047_v61, %v1383_v24  ;;  %3615 = vmatprep.mubr.msk.f32.mxu0 %vm111_vm0, %v1412_v13 }
 0x56e   :  { %3616 = vmatmul.mubr.msk.f32.vlgmr.msra.gmra.mrb[28].mxu0 %vm111_vm0, %v1413_v6  ;;  %v1415_v27 = vmax.f32 %v1389_v23, 0.0 }
 0x56f   :  { %v1414_v25 = vmax.f32 %v1384_v11, 0.0  ;;  %v3595_v26 = vpop.f32.mrb[40].mxu1  ;;  %3956 = vmatpush3.bf16.msra.mxu0 %v3953_v19  ;;  %v1947_v19 = vld [vmem:[%s5134_s11 + $0x18] sm:$0xff] }
 0x570   :  { %v1399_v28 = vadd.f32 %v3595_v26, %v3047_v61  ;;  %v1393_v29 = vpop.f32.mrb[41].mxu1  ;;  %3958 = vmatprep.subr.bf16.mxu0 %v3957_v54 }
 0x571   :  { %v1394_v30 = vadd.f32 %v3047_v61, %v1393_v29  ;;  %3618 = vmatprep.mubr.msk.f32.mxu0 %vm111_vm0, %v1414_v25 }
 0x572   :  { %3619 = vmatmul.mubr.msk.f32.gmra.mrb[30].mxu0 %vm111_vm0, %v1415_v27  ;;  %v1417_v35 = vmax.f32 %v1399_v28, 0.0 }
 0x573   :  { %v1416_v32 = vmax.f32 %v1394_v30, 0.0  ;;  %v3598_v33 = vpop.f32.mrb[42].mxu1  ;;  %3960 = vmatpush3.bf16.msra.mxu0 %v3957_v54 }
 0x574   :  { %v1409_v38 = vadd.f32 %v3598_v33, %v3047_v61  ;;  %v1403_v10 = vpop.f32.mrb[43].mxu1 }
 0x575   :  { %v1404_v9 = vadd.f32 %v3047_v61, %v1403_v10  ;;  %3621 = vmatprep.mubr.msk.f32.mxu0 %vm111_vm0, %v1416_v32  ;;  %v1945_v32 = vld [vmem:[%s5134_s11 + $0x8] sm:$0xff] }
 0x576   :  { %3622 = vmatmul.mubr.msk.f32.gmra.mrb[32].mxu0 %vm111_vm0, %v1417_v35  ;;  %v1419_v16 = vmax.f32 %v1409_v38, 0.0 }
 0x577   :  { %v1418_v15 = vmax.f32 %v1404_v9, 0.0 }
 0x579   :  { %3624 = vmatprep.mubr.msk.f32.mxu0 %vm111_vm0, %v1418_v15 }
 0x57a   :  { %3625 = vmatmul.mubr.msk.f32.gmra.mrb[34].mxu0 %vm111_vm0, %v1419_v16 }
 0x5ce   :  { %v3569_v2 = vpop.f32.mrb[20].mxu0 }
 0x5cf   :  { %v1170_v39 = vadd.f32 %v3569_v2, %v3024_v18  ;;  %v1164_v41 = vpop.f32.mrb[21].mxu0  ;;  %v3076_v2 = vld [vmem:[%s5159_s26 + $0x90] sm:$0xff] }
 0x5d0   :  { %v1165_v1 = vadd.f32 %v3024_v18, %v1164_v41  ;;  %v3077_v41 = vld [vmem:[%s5159_s26 + $0x98] sm:$0xff] }
 0x5d1   :  { %v1204_v42 = vmax.f32 %v1170_v39, 0.0 }
 0x5d2   :  { %v1203_v46 = vmax.f32 %v1165_v1, 0.0  ;;  %v3572_v48 = vpop.f32.mrb[22].mxu0  ;;  %v3965_v1 = vpack.c.bf16 %v3077_v41, %v3076_v2 }
 0x5d3   :  { %v4761_v20 = vadd.f32 %v1204_v42, %v4574_v36  ;;  %v1180_v51 = vadd.f32 %v3572_v48, %v3024_v18  ;;  %v1174_v53 = vpop.f32.mrb[23].mxu0  ;;  %v3078_v42 = vld [vmem:[%s5159_s26 + $0xa0] sm:$0xff]  ;;  %v1946_v48 = vld [vmem:[%s5134_s11 + $0x10] sm:$0xff] }
 0x5d4   :  { %v4764_v55 = vadd.f32 %v1203_v46, %v4577_v37  ;;  %v1175_v56 = vadd.f32 %v3024_v18, %v1174_v53  ;;  %v3969_v5 = vpack.c.bf16 %v3079_v44, %v3078_v42 }
 0x5d5   :  { %v1206_v8 = vmax.f32 %v1180_v51, 0.0 }
 0x5d6   :  { %v1205_v60 = vmax.f32 %v1175_v56, 0.0  ;;  %v3575_v61 = vpop.f32.mrb[24].mxu0  ;;  %v1563_v62 = vpack.c.bf16 %v4761_v20, %v4764_v55  ;;  %v3981_v56 = vpack.c.bf16 %v1947_v19, %v1946_v48 }
 0x5d7   :  { %v4769_v63 = vadd.f32 %v1206_v8, %v4580_v14  ;;  %v1190_v36 = vadd.f32 %v3575_v61, %v3024_v18  ;;  %v1184_v0 = vpop.f32.mrb[25].mxu0 }
 0x5d8   :  { %v4772_v12 = vadd.f32 %v1205_v60, %v4587_v17  ;;  %v1185_v37 = vadd.f32 %v3024_v18, %v1184_v0  ;;  %3627 = vmatprep.subr.bf16.mxu1 %v1563_v62 }
 0x5d9   :  { %v1208_v13 = vmax.f32 %v1190_v36, 0.0  ;;  %3628 = vmatpush3.bf16.msra.mxu1 %v1563_v62  ;;  %v3056_v36 = vld [vmem:[%s5133_s10 + $0x1] ss:$0 sm:$0xff] }
 0x5da   :  { %v1207_v4 = vmax.f32 %v1185_v37, 0.0  ;;  %v3578_v6 = vpop.f32.mrb[26].mxu0  ;;  %v1564_v23 = vpack.c.bf16 %v4769_v63, %v4772_v12 }
 0x5db   :  { %v4777_v24 = vadd.f32 %v1208_v13, %v4596_v3  ;;  %v1200_v14 = vadd.f32 %v3578_v6, %v3024_v18  ;;  %v1194_v11 = vpop.f32.mrb[27].mxu0 }
 0x5dc   :  { %v4780_v25 = vadd.f32 %v1207_v4, %v4599_v47  ;;  %v1195_v17 = vadd.f32 %v3024_v18, %v1194_v11  ;;  %3629 = vmatprep.subr.bf16.mxu1 %v1564_v23  ;;  %v4146_v47 = vld [vmem:[%s5157_s25 + $0x10] sm:$0xff]   ;;  %v3075_v18 = vld [vmem:[%s5159_s26 + $0x88] sm:$0xff] }
 0x5dd   :  { %v1210_v26 = vmax.f32 %v1200_v14, 0.0  ;;  %3630 = vmatpush3.bf16.msra.mxu1 %v1564_v23 }
 0x5de   :  { %v1209_v27 = vmax.f32 %v1195_v17, 0.0  ;;  %v1565_v28 = vpack.c.bf16 %v4777_v24, %v4780_v25 }
 0x5df   :  { %v4785_v29 = vadd.f32 %v1210_v26, %v4606_v59 }
 0x5e0   :  { %v4788_v30 = vadd.f32 %v1209_v27, %v4609_v7  ;;  %3631 = vmatprep.subr.bf16.mxu1 %v1565_v28  ;;  %v1944_v7 = vld [vmem:[%s5134_s11] sm:$0xff] }
 0x5e1   :  { %3632 = vmatpush3.bf16.msra.mxu1 %v1565_v28 }
 0x5e2   :  { %v1566_v3 = vpack.c.bf16 %v4785_v29, %v4788_v30 }
 0x5e4   :  { %3633 = vmatprep.subr.bf16.mxu1 %v1566_v3 }
 0x5e5   :  { %3634 = vmatpush3.bf16.msra.mxu1 %v1566_v3 }
 0x5e8   :  { %3636 = vmatmul.mubr.msk.bf16.vlgmr.msra.gmra.mrb[44].mxu1 %vm111_vm0, %v4394_v21  ;;  %v3977_v21 = vpack.c.bf16 %v1945_v32, %v1944_v7 }
 0x5e9   :  { %3639 = vmatprep.mubr.msk.bf16.mxu1 %vm111_vm0, %v4146_v47 }
 0x5ea   :  { %3978 = vmatprep.subr.bf16.mxu0 %v3977_v21 }
 0x5f0   :  { %3640 = vmatmul.mubr.msk.bf16.gmra.mrb[48].mxu1 %vm111_vm0, %v4399_v22  ;;  %v3074_v22 = vld [vmem:[%s5159_s26 + $0x80] sm:$0xff] }
 0x5f1   :  { %v3961_v39 = vpack.c.bf16 %v3075_v18, %v3074_v22  ;;  %v2094_v22 = vld [vmem:[%s5136_s13 + $0x10] sm:$0xff]  ;;  %v2095_v18 = vld [vmem:[%s5136_s13 + $0x18] sm:$0xff] }
 0x5f2   :  { %v3989_v44 = vpack.c.bf16 %v2095_v18, %v2094_v22  ;;  %v4200_v22 = vmov 0.0   ;;  %v3092_v18 = vld [vmem:[%s5129_s6 + $0x2] ss:$0 sm:$0xff] }
 0x5f3   :  { %3962 = vmatprep.subr.bf16.mxu1 %v3961_v39 }
 0x5f4   :  { %3964 = vmatpush3.bf16.msra.mxu1 %v3961_v39 }
 0x5f5   :  { %3966 = vmatprep.subr.bf16.mxu1 %v3965_v1 }
 0x5f8   :  { %3968 = vmatpush3.bf16.msra.mxu1 %v3965_v1 }
 0x5f9   :  { %3970 = vmatprep.subr.bf16.mxu1 %v3969_v5 }
 0x5fc   :  { %3972 = vmatpush3.bf16.msra.mxu1 %v3969_v5 }
 0x641   :  { %v3617_v59 = vpop.f32.mrb[28].mxu0 }
 0x642   :  { %v1516_v33 = vpop.f32.mrb[29].mxu0  ;;  %v1522_v14 = vadd.f32 %v3617_v59, %v3056_v36 }
 0x643   :  { %v1517_v6 = vadd.f32 %v3056_v36, %v1516_v33 }
 0x644   :  { %v1556_v27 = vadd.f32 %v1522_v14, %v4525_v31 }
 0x645   :  { %v3620_v35 = vpop.f32.mrb[30].mxu0  ;;  %v1555_v17 = vadd.f32 %v1517_v6, %v4528_v34  ;;  %v3101_v6 = vld [vmem:[%s5135_s12] ss:$0 sm:$0xff] }
 0x646   :  { %v1526_v38 = vpop.f32.mrb[31].mxu0  ;;  %v1532_v28 = vadd.f32 %v3620_v35, %v3056_v36 }
 0x647   :  { %v1527_v26 = vadd.f32 %v3056_v36, %v1526_v38  ;;  %v3083_v38 = vld [vmem:[%s5160_s3 + $0x2] ss:$0 sm:$0xff] }
 0x648   :  { %v1558_v59 = vadd.f32 %v1532_v28, %v4533_v40 }
 0x649   :  { %v3623_v10 = vpop.f32.mrb[32].mxu0  ;;  %v1557_v3 = vadd.f32 %v1527_v26, %v4536_v43 }
 0x64a   :  { %v1536_v9 = vpop.f32.mrb[33].mxu0  ;;  %v1542_v7 = vadd.f32 %v3623_v10, %v3056_v36 }
 0x64b   :  { %v1537_v47 = vadd.f32 %v3056_v36, %v1536_v9 }
 0x64c   :  { %v1560_v31 = vadd.f32 %v1542_v7, %v4541_v49  ;;  %v3081_v49 = vld [vmem:[%s5159_s26 + $0xb8] sm:$0xff] }
 0x64d   :  { %v4806_v15 = vpop.f32.mrb[34].mxu0  ;;  %v1559_v34 = vadd.f32 %v1537_v47, %v4544_v52  ;;  %v3080_v52 = vld [vmem:[%s5159_s26 + $0xb0] sm:$0xff] }
 0x64e   :  { %v1546_v16 = vpop.f32.mrb[35].mxu0  ;;  %v1552_v33 = vadd.f32 %v4806_v15, %v3056_v36 }
 0x64f   :  { %v1547_v32 = vadd.f32 %v3056_v36, %v1546_v16 }
 0x650   :  { %v1562_v40 = vadd.f32 %v1552_v33, %v4549_v57  ;;  %v2093_v57 = vld [vmem:[%s5136_s13 + $0x8] sm:$0xff] }
 0x651   :  { %v1561_v43 = vadd.f32 %v1547_v32, %v4552_v58  ;;  %v2092_v58 = vld [vmem:[%s5136_s13] sm:$0xff] }
 0x652   :  { %v3985_v35 = vpack.c.bf16 %v2093_v57, %v2092_v58 }
 0x6bb   :  { %v3637_v45 = vpop.f32.mrb[44].mxu1 }
 0x6bc   :  { %v1601_v46 = vpop.f32.mrb[45].mxu1  ;;  %v1634_v8 = vadd.f32 %v3637_v45, %v4772_v12  ;;  %v2096_v45 = vld [vmem:[%s5136_s13 + $0x20] sm:$0xff] }
 0x6bd   :  { %v1632_v50 = vadd.f32 %v1601_v46, %v4764_v55  ;;  %v3638_v51 = vpop.f32.mrb[46].mxu1  ;;  %v2097_v46 = vld [vmem:[%s5136_s13 + $0x28] sm:$0xff] }
 0x6be   :  { %v1604_v53 = vpop.f32.mrb[47].mxu1  ;;  %v1635_v60 = vadd.f32 %v3638_v51, %v4769_v63 }
 0x6bf   :  { %v1633_v54 = vadd.f32 %v1604_v53, %v4761_v20  ;;  %3651 = vmatprep.mubr.msk.f32.mxu0 %vm217_vm1, %v1632_v50 }
 0x6c1   :  { %3652 = vmatmul.mubr.msk.f32.vlgmr.msra.gmra.mrb[36].mxu0 %vm217_vm1, %v1633_v54  ;;  %v3993_v54 = vpack.c.bf16 %v2097_v46, %v2096_v45 }
 0x6c2   :  { %3654 = vmatprep.mubr.msk.f32.mxu0 %vm217_vm1, %v1634_v8  ;;  %3980 = vmatpush3.bf16.msra.mxu0 %v3977_v21  ;;  %v3973_v21 = vpack.c.bf16 %v3081_v49, %v3080_v52  ;;  %v2098_v8 = vld [vmem:[%s5136_s13 + $0x30] sm:$0xff] }
 0x6c3   :  { %v3641_v61 = vpop.f32.mrb[48].mxu1  ;;  %3982 = vmatprep.subr.bf16.mxu0 %v3981_v56 }
 0x6c4   :  { %v1617_v62 = vpop.f32.mrb[49].mxu1  ;;  %v1638_v23 = vadd.f32 %v3641_v61, %v4788_v30  ;;  %3974 = vmatprep.subr.bf16.mxu1 %v3973_v21 }
 0x6c5   :  { %v1636_v0 = vadd.f32 %v1617_v62, %v4780_v25  ;;  %v3642_v37 = vpop.f32.mrb[50].mxu1  ;;  %3655 = vmatmul.mubr.msk.f32.gmra.mrb[38].mxu0 %vm217_vm1, %v1635_v60  ;;  %3976 = vmatpush3.bf16.msra.mxu1 %v3973_v21  ;;  %v2099_v60 = vld [vmem:[%s5136_s13 + $0x38] sm:$0xff] }
 0x6c6   :  { %v1620_v13 = vpop.f32.mrb[51].mxu1  ;;  %3984 = vmatpush3.bf16.msra.mxu0 %v3981_v56  ;;  %v1639_v11 = vadd.f32 %v3642_v37, %v4785_v29  ;;  %3986 = vmatprep.subr.bf16.mxu1 %v3985_v35 }
 0x6c7   :  { %v1637_v4 = vadd.f32 %v1620_v13, %v4777_v24  ;;  %3657 = vmatprep.mubr.msk.f32.mxu0 %vm217_vm1, %v1636_v0  ;;  %v3997_v13 = vpack.c.bf16 %v2099_v60, %v2098_v8 }
 0x6c9   :  { %3658 = vmatmul.mubr.msk.f32.gmra.mrb[40].mxu0 %vm217_vm1, %v1637_v4 }
 0x6ca   :  { %3660 = vmatprep.mubr.msk.f32.mxu0 %vm217_vm1, %v1638_v23 }
 0x6cd   :  { %3661 = vmatmul.mubr.msk.f32.gmra.mrb[42].mxu0 %vm217_vm1, %v1639_v11 }
 0x6ce   :  { %3699 = vmatprep.mubr.msk.f32.mxu0 %vm217_vm1, %v1555_v17 }
 0x6d1   :  { %3700 = vmatmul.mubr.msk.f32.vlgmr.msra.gmra.mrb[44].mxu0 %vm217_vm1, %v1556_v27 }
 0x6d2   :  { %3702 = vmatprep.mubr.msk.f32.mxu0 %vm217_vm1, %v1557_v3 }
 0x6d5   :  { %3703 = vmatmul.mubr.msk.f32.gmra.mrb[46].mxu0 %vm217_vm1, %v1558_v59 }
 0x6d6   :  { %3705 = vmatprep.mubr.msk.f32.mxu0 %vm217_vm1, %v1559_v34 }
 0x6d9   :  { %3706 = vmatmul.mubr.msk.f32.gmra.mrb[48].mxu0 %vm217_vm1, %v1560_v31 }
 0x6da   :  { %3708 = vmatprep.mubr.msk.f32.mxu0 %vm217_vm1, %v1561_v43 }
 0x6dd   :  { %3709 = vmatmul.mubr.msk.f32.gmra.mrb[50].mxu0 %vm217_vm1, %v1562_v40 }
 0x6de   :  { %3755 = vmatprep.mubr.msk.f32.mxu0 %vm4199_vm2, %v4200_v22 }
 0x794   :  { %v3653_v10 = vpop.f32.mrb[36].mxu0 }
 0x795   :  { %v1760_v9 = vadd.f32 %v3653_v10, %v3083_v38  ;;  %v1754_v15 = vpop.f32.mrb[37].mxu0 }
 0x796   :  { %v1755_v16 = vadd.f32 %v3083_v38, %v1754_v15  ;;  %v4197_v15 = vmov 0.0|0.0  }
 0x797   :  { %v1794_v41 = vmax.f32 %v1760_v9, 0.0  ;;  %4001 = vmatprep.subr.bf16.mxu0 %v4197_v15 }
 0x798   :  { %v1793_v2 = vmax.f32 %v1755_v16, 0.0  ;;  %v3656_v39 = vpop.f32.mrb[38].mxu0  ;;  %v4198_v16 = vmov 0  }
 0x799   :  { %v1770_v1 = vadd.f32 %v3656_v39, %v3083_v38  ;;  %v1764_v42 = vpop.f32.mrb[39].mxu0  ;;  %4104 = vset.pattern.permute.xlu1 %v4198_v16  ;;  %4105 = vset.pattern.permute.xlu0 %v4198_v16 }
 0x79a   :  { %v1765_v5 = vadd.f32 %v3083_v38, %v1764_v42  ;;  %3679 = vmatprep.mubr.msk.f32.mxu1 %vm111_vm0, %v1793_v2 }
 0x79b   :  { %3680 = vmatmul.mubr.msk.f32.vlgmr.msra.gmra.mrb[52].mxu1 %vm111_vm0, %v1794_v41  ;;  %v1796_v50 = vmax.f32 %v1770_v1, 0.0 }
 0x79c   :  { %v1795_v48 = vmax.f32 %v1765_v5, 0.0  ;;  %v3659_v19 = vpop.f32.mrb[40].mxu0  ;;  %3988 = vmatpush3.bf16.msra.mxu1 %v3985_v35 }
 0x79d   :  { %v1780_v51 = vadd.f32 %v3659_v19, %v3083_v38  ;;  %v1774_v53 = vpop.f32.mrb[41].mxu0  ;;  %3990 = vmatprep.subr.bf16.mxu1 %v3989_v44 }
 0x79e   :  { %v1775_v56 = vadd.f32 %v3083_v38, %v1774_v53  ;;  %3682 = vmatprep.mubr.msk.f32.mxu1 %vm111_vm0, %v1795_v48 }
 0x79f   :  { %3683 = vmatmul.mubr.msk.f32.gmra.mrb[54].mxu1 %vm111_vm0, %v1796_v50  ;;  %v1798_v36 = vmax.f32 %v1780_v51, 0.0 }
 0x7a0   :  { %v1797_v61 = vmax.f32 %v1775_v56, 0.0  ;;  %v3662_v62 = vpop.f32.mrb[42].mxu0  ;;  %3992 = vmatpush3.bf16.msra.mxu1 %v3989_v44 }
 0x7a1   :  { %v1790_v0 = vadd.f32 %v3662_v62, %v3083_v38  ;;  %v1784_v37 = vpop.f32.mrb[43].mxu0  ;;  %3994 = vmatprep.subr.bf16.mxu1 %v3993_v54 }
 0x7a2   :  { %v1785_v4 = vadd.f32 %v3083_v38, %v1784_v37  ;;  %3685 = vmatprep.mubr.msk.f32.mxu1 %vm111_vm0, %v1797_v61 }
 0x7a3   :  { %3686 = vmatmul.mubr.msk.f32.gmra.mrb[56].mxu1 %vm111_vm0, %v1798_v36  ;;  %v1800_v11 = vmax.f32 %v1790_v0, 0.0  ;;  %v3110_v0 = vld [vmem:[#allocation2] ss:$0 sm:$0xff] }
 0x7a4   :  { %v1799_v23 = vmax.f32 %v1785_v4, 0.0  ;;  %v3701_v14 = vpop.f32.mrb[44].mxu0  ;;  %3996 = vmatpush3.bf16.msra.mxu1 %v3993_v54 }
 0x7a5   :  { %v2051_v17 = vadd.f32 %v3701_v14, %v3101_v6  ;;  %v2045_v26 = vpop.f32.mrb[45].mxu0  ;;  %3998 = vmatprep.subr.bf16.mxu1 %v3997_v13 }
 0x7a6   :  { %v2046_v27 = vadd.f32 %v3101_v6, %v2045_v26  ;;  %3688 = vmatprep.mubr.msk.f32.mxu1 %vm111_vm0, %v1799_v23 }
 0x7a7   :  { %3689 = vmatmul.mubr.msk.f32.gmra.mrb[58].mxu1 %vm111_vm0, %v1800_v11  ;;  %v2085_v47 = vmax.f32 %v2051_v17, 0.0 }
 0x7a8   :  { %v2084_v28 = vmax.f32 %v2046_v27, 0.0  ;;  %v3704_v3 = vpop.f32.mrb[46].mxu0  ;;  %4000 = vmatpush3.bf16.msra.mxu1 %v3997_v13 }
 0x7a9   :  { %v2061_v59 = vadd.f32 %v3704_v3, %v3101_v6  ;;  %v2055_v7 = vpop.f32.mrb[47].mxu0  ;;  %4013 = vmatprep.subr.bf16.mxu1 %v4197_v15 }
 0x7aa   :  { %v2056_v34 = vadd.f32 %v3101_v6, %v2055_v7  ;;  %3727 = vmatprep.mubr.msk.f32.mxu1 %vm111_vm0, %v2084_v28 }
 0x7ab   :  { %3728 = vmatmul.mubr.msk.f32.vlgmr.msra.gmra.mrb[60].mxu1 %vm111_vm0, %v2085_v47  ;;  %v2087_v33 = vmax.f32 %v2061_v59, 0.0 }
 0x7ac   :  { %v2086_v32 = vmax.f32 %v2056_v34, 0.0  ;;  %v3707_v31 = vpop.f32.mrb[48].mxu0 }
 0x7ad   :  { %v2071_v43 = vadd.f32 %v3707_v31, %v3101_v6  ;;  %v2065_v40 = vpop.f32.mrb[49].mxu0 }
 0x7ae   :  { %v2066_v52 = vadd.f32 %v3101_v6, %v2065_v40  ;;  %3730 = vmatprep.mubr.msk.f32.mxu1 %vm111_vm0, %v2086_v32 }
 0x7af   :  { %3731 = vmatmul.mubr.msk.f32.gmra.mrb[62].mxu1 %vm111_vm0, %v2087_v33  ;;  %v2089_v58 = vmax.f32 %v2071_v43, 0.0 }
 0x7b0   :  { %v2088_v49 = vmax.f32 %v2066_v52, 0.0  ;;  %v3710_v21 = vpop.f32.mrb[50].mxu0 }
 0x7b1   :  { %v2081_v57 = vadd.f32 %v3710_v21, %v3101_v6  ;;  %v2075_v35 = vpop.f32.mrb[51].mxu0 }
 0x7b2   :  { %v2076_v38 = vadd.f32 %v3101_v6, %v2075_v35  ;;  %3733 = vmatprep.mubr.msk.f32.mxu1 %vm111_vm0, %v2088_v49 }
 0x7b3   :  { %3734 = vmatmul.mubr.msk.f32.gmra.mrb[64].mxu1 %vm111_vm0, %v2089_v58  ;;  %v2091_v9 = vmax.f32 %v2081_v57, 0.0 }
 0x7b4   :  { %v2090_v10 = vmax.f32 %v2076_v38, 0.0 }
 0x7b6   :  { %3736 = vmatprep.mubr.msk.f32.mxu1 %vm111_vm0, %v2090_v10 }
 0x7b7   :  { %3737 = vmatmul.mubr.msk.f32.gmra.mrb[66].mxu1 %vm111_vm0, %v2091_v9 }
 0x7b8   :  { %3774 = vmatprep.mubr.msk.f32.mxu1 %vm4199_vm2, %v4200_v22 }
 0x86e   :  { %v3681_v2 = vpop.f32.mrb[52].mxu1 }
 0x86f   :  { %v1903_v39 = vadd.f32 %v3681_v2, %v3092_v18  ;;  %v1897_v41 = vpop.f32.mrb[53].mxu1 }
 0x870   :  { %v1898_v1 = vadd.f32 %v3092_v18, %v1897_v41 }
 0x871   :  { %v4930_v42 = vadd.f32 %v1903_v39, %v4761_v20 }
 0x872   :  { %v4933_v44 = vadd.f32 %v1898_v1, %v4764_v55  ;;  %v3684_v5 = vpop.f32.mrb[54].mxu1 }
 0x873   :  { %v1913_v45 = vadd.f32 %v3684_v5, %v3092_v18  ;;  %v1907_v46 = vpop.f32.mrb[55].mxu1 }
 0x874   :  { %v4014_v48 = vpack.c.bf16 %v4930_v42, %v4933_v44  ;;  %v1908_v19 = vadd.f32 %v3092_v18, %v1907_v46 }
 0x875   :  { %v4938_v50 = vadd.f32 %v1913_v45, %v4769_v63 }
 0x876   :  { %v4941_v51 = vadd.f32 %v1908_v19, %v4772_v12  ;;  %v3687_v53 = vpop.f32.mrb[56].mxu1  ;;  %4015 = vmatpush3.bf16.msra.mxu1 %v4014_v48 }
 0x877   :  { %v1923_v20 = vadd.f32 %v3687_v53, %v3092_v18  ;;  %v1917_v54 = vpop.f32.mrb[57].mxu1  ;;  %4016 = vmatprep.subr.bf16.mxu1 %v4197_v15 }
 0x878   :  { %v4017_v55 = vpack.c.bf16 %v4938_v50, %v4941_v51  ;;  %v1918_v56 = vadd.f32 %v3092_v18, %v1917_v54 }
 0x879   :  { %v4947_v8 = vadd.f32 %v1923_v20, %v4777_v24 }
 0x87a   :  { %v4950_v60 = vadd.f32 %v1918_v56, %v4780_v25  ;;  %v3690_v63 = vpop.f32.mrb[58].mxu1  ;;  %4018 = vmatpush3.bf16.msra.mxu1 %v4017_v55  ;;  %v4201_v55 = vmov 1.0|1.0  }
 0x87b   :  { %v1933_v12 = vadd.f32 %v3690_v63, %v3092_v18  ;;  %v1927_v61 = vpop.f32.mrb[59].mxu1  ;;  %4019 = vmatprep.subr.bf16.mxu1 %v4197_v15 }
 0x87c   :  { %v4020_v62 = vpack.c.bf16 %v4947_v8, %v4950_v60  ;;  %v1928_v36 = vadd.f32 %v3092_v18, %v1927_v61 }
 0x87d   :  { %v4956_v37 = vadd.f32 %v1933_v12, %v4785_v29  ;;  %v4967_v29 = vld [vmem:[%s5161_s4] sm:$0xf] }
 0x87e   :  { %v4959_v24 = vadd.f32 %v1928_v36, %v4788_v30  ;;  %v3729_v13 = vpop.f32.mrb[60].mxu1  ;;  %4021 = vmatpush3.bf16.msra.mxu1 %v4020_v62 }
 0x87f   :  { %v2203_v25 = vadd.f32 %v3729_v13, %v3110_v0  ;;  %v2197_v4 = vpop.f32.mrb[61].mxu1  ;;  %4022 = vmatprep.subr.bf16.mxu1 %v4197_v15 }
 0x880   :  { %v4023_v6 = vpack.c.bf16 %v4956_v37, %v4959_v24  ;;  %v2198_v23 = vadd.f32 %v3110_v0, %v2197_v4 }
 0x881   :  { %v3120_v14 = vmul.f32 -1.442695, %v2203_v25 }
 0x882   :  { %v3119_v11 = vmul.f32 -1.442695, %v2198_v23  ;;  %v3732_v17 = vpop.f32.mrb[62].mxu1  ;;  %4024 = vmatpush3.bf16.msra.mxu1 %v4023_v6 }
 0x883   :  { %4110 = vpow2.f32 %v3120_v14  ;;  %v2213_v30 = vadd.f32 %v3732_v17, %v3110_v0  ;;  %v2207_v26 = vpop.f32.mrb[63].mxu1  ;;  %4037 = vmatprep.subr.bf16.mxu1 %v4197_v15 }
 0x884   :  { %4112 = vpow2.f32 %v3119_v11  ;;  %v2208_v27 = vadd.f32 %v3110_v0, %v2207_v26 }
 0x885   :  { %v3122_v28 = vmul.f32 -1.442695, %v2213_v30  ;;  %3775 = vmatmul.mubr.msk.f32.vlgmr.msra.gmra.mrb[68].mxu1 %vm111_vm0, %v4967_v29 }
 0x886   :  { %v3121_v3 = vmul.f32 -1.442695, %v2208_v27  ;;  %v3735_v47 = vpop.f32.mrb[64].mxu1  ;;  %3812 = vmatprep.mubr.msk.f32.mxu1 %vm4199_vm2, %v4200_v22 }
 0x887   :  { %4114 = vpow2.f32 %v3122_v28  ;;  %v2223_v59 = vadd.f32 %v3735_v47, %v3110_v0  ;;  %v2217_v7 = vpop.f32.mrb[65].mxu1 }
 0x888   :  { %4116 = vpow2.f32 %v3121_v3  ;;  %v2218_v34 = vadd.f32 %v3110_v0, %v2217_v7 }
 0x889   :  { %v3124_v32 = vmul.f32 -1.442695, %v2223_v59 }
 0x88a   :  { %v3123_v31 = vmul.f32 -1.442695, %v2218_v34  ;;  %v3738_v33 = vpop.f32.mrb[66].mxu1 }
 0x88b   :  { %4118 = vpow2.f32 %v3124_v32  ;;  %v2233_v43 = vadd.f32 %v3738_v33, %v3110_v0  ;;  %v2227_v40 = vpop.f32.mrb[67].mxu1  ;;  %v2683_v33 = vld [vmem:[%s5138_s15 + $0x18] sm:$0xff] }
 0x88c   :  { %4120 = vpow2.f32 %v3123_v31  ;;  %v2228_v52 = vadd.f32 %v3110_v0, %v2227_v40  ;;  %v2682_v31 = vld [vmem:[%s5138_s15 + $0x10] sm:$0xff]  ;;  %v2641_v40 = vsel %vm2640_vm15, %v4967_v29, 0.0 }
 0x88d   :  { %v4111_v49 = vpop.eup %4110  ;;  %v3126_v21 = vmul.f32 -1.442695, %v2233_v43  ;;  %v4053_v43 = vpack.c.bf16 %v2683_v33, %v2682_v31  ;;  %v2788_v31 = vld [vmem:[%s5140_s17 + $0x38] sm:$0xff] }
 0x88e   :  { %v4113_v58 = vpop.eup %4112  ;;  %v2261_v57 = vadd.f32 1.0, %v4111_v49  ;;  %v3125_v35 = vmul.f32 -1.442695, %v2228_v52 }
 0x88f   :  { %v2260_v38 = vadd.f32 1.0, %v4113_v58  ;;  %4122 = vpow2.f32 %v3126_v21  ;;  %v2647_v21 = vlaneseq }
 0x890   :  { %4124 = vrcp.f32 %v2261_v57 }
 0x891   :  { %v4115_v10 = vpop.eup %4114  ;;  %4126 = vrcp.f32 %v2260_v38  ;;  %v2648_v58 = vshrl.u32 %v2647_v21, 7 }
 0x892   :  { %v4117_v9 = vpop.eup %4116  ;;  %v2263_v16 = vadd.f32 1.0, %v4115_v10  ;;  %4128 = vpow2.f32 %v3125_v35 }
 0x893   :  { %v2262_v18 = vadd.f32 1.0, %v4117_v9  ;;  %v2649_v57 = vsub.s32 0, %v2648_v58  ;;  %v2653_v35 = vsub.s32 1, %v2648_v58  ;;  %v2657_v38 = vsub.s32 2, %v2648_v58 }
 0x894   :  { %4130 = vrcp.f32 %v2263_v16  ;;  %v2661_v10 = vsub.s32 3, %v2648_v58 }
 0x895   :  { %v4119_v2 = vpop.eup %4118  ;;  %4132 = vrcp.f32 %v2262_v18 }
 0x896   :  { %v4121_v39 = vpop.eup %4120  ;;  %v2265_v41 = vadd.f32 1.0, %v4119_v2 }
 0x897   :  { %v2264_v1 = vadd.f32 1.0, %v4121_v39 }
 0x898   :  { %4134 = vrcp.f32 %v2265_v41 }
 0x899   :  { %v4123_v5 = vpop.eup %4122  ;;  %4136 = vrcp.f32 %v2264_v1 }
 0x89a   :  { %v4974_v45 = vpop.eup %4124  ;;  %v2267_v46 = vadd.f32 1.0, %v4123_v5 }
 0x89b   :  { %v4976_v48 = vpop.eup %4126  ;;  %2291 = vperm.xlu1 %4104, %v4974_v45   ;;  %vm2547_vm3 = vcmp.gt.f32.partialorder %v4974_v45, 0.0 }
 0x89c   :  { %v4129_v19 = vpop.eup %4128  ;;  %4138 = vrcp.f32 %v2267_v46  ;;  %2286 = vperm.xlu0 %4105, %v4976_v48   ;;  %vm2546_vm4 = vcmp.gt.f32.partialorder %v4976_v48, 0.0  ;;  %v4026_v53 = vpack.c.bf16 %v4974_v45, %v4976_v48 }
 0x89d   :  { %v2266_v20 = vadd.f32 1.0, %v4129_v19  ;;  %vm4038_vm5 = vmpackc.low %vm2547_vm3, %vm2546_vm4  ;;  %vm2890_vm3 = vcmask 257024   ;;  %vm2663_vm4 = vcmask 1043456   ;;  %v2781_v19 = vld [vmem:[%s5140_s17] sm:$0xff] }
 0x89e   :  { %v4984_v54 = vpop.eup %4130  ;;  %4039 = vmatpush3.bf16.msk.msra.mxu1 %vm4038_vm5, %v4201_v55  ;;  %vm2919_vm5 = vcmask 0  }
 0x89f   :  { %v4986_v56 = vpop.eup %4132  ;;  %4140 = vrcp.f32 %v2266_v20  ;;  %4040 = vmatprep.subr.bf16.mxu1 %v4197_v15  ;;  %vm2549_vm6 = vcmp.gt.f32.partialorder %v4984_v54, 0.0 }
 0x8a0   :  { %2296 = vperm.xlu1 %4104, %v4986_v56   ;;  %2301 = vperm.xlu0 %4105, %v4984_v54   ;;  %vm2548_vm7 = vcmp.gt.f32.partialorder %v4986_v56, 0.0  ;;  %v4029_v63 = vpack.c.bf16 %v4984_v54, %v4986_v56 }
 0x8a1   :  { %vm4041_vm8 = vmpackc.low %vm2549_vm6, %vm2548_vm7 }
 0x8a2   :  { %v4135_v12 = vpop.eup %4134  ;;  %4042 = vmatpush3.bf16.msk.msra.mxu1 %vm4041_vm8, %v4201_v55 }
 0x8a3   :  { %v4137_v61 = vpop.eup %4136  ;;  %4043 = vmatprep.subr.bf16.mxu1 %v4197_v15  ;;  %vm2551_vm9 = vcmp.gt.f32.partialorder %v4135_v12, 0.0 }
 0x8a4   :  { %2306 = vperm.xlu1 %4104, %v4137_v61   ;;  %2311 = vperm.xlu0 %4105, %v4135_v12   ;;  %vm2550_vm10 = vcmp.gt.f32.partialorder %v4137_v61, 0.0  ;;  %v4032_v62 = vpack.c.bf16 %v4135_v12, %v4137_v61  ;;  %v2783_v12 = vld [vmem:[%s5140_s17 + $0x10] sm:$0xff]  ;;  %v2784_v61 = vld [vmem:[%s5140_s17 + $0x18] sm:$0xff] }
 0x8a5   :  { %vm4044_vm11 = vmpackc.low %vm2551_vm9, %vm2550_vm10 }
 0x8a6   :  { %v4139_v36 = vpop.eup %4138  ;;  %4045 = vmatpush3.bf16.msk.msra.mxu1 %vm4044_vm11, %v4201_v55 }
 0x8a7   :  { %4046 = vmatprep.subr.bf16.mxu1 %v4197_v15  ;;  %vm2553_vm12 = vcmp.gt.f32.partialorder %v4139_v36, 0.0 }
 0x8a8   :  { %2321 = vperm.xlu0 %4105, %v4139_v36  }
 0x8a9   :  { %v4141_v0 = vpop.eup %4140 }
 0x8aa   :  { %2316 = vperm.xlu1 %4104, %v4141_v0   ;;  %vm2552_vm13 = vcmp.gt.f32.partialorder %v4141_v0, 0.0  ;;  %v4035_v13 = vpack.c.bf16 %v4139_v36, %v4141_v0  ;;  %v4059_v0 = vpack.c.bf16 %v2784_v61, %v2783_v12 }
 0x8ab   :  { %vm4047_vm14 = vmpackc.low %vm2553_vm12, %vm2552_vm13 }
 0x8ac   :  { %4048 = vmatpush3.bf16.msk.msra.mxu1 %vm4047_vm14, %v4201_v55 }
 0x8af   :  { %3813 = vmatmul.mubr.msk.f32.vlgmr.msra.gmra.mrb[70].mxu1 %vm111_vm0, %v4967_v29 }
 0x8ce   :  { %2642 = vadd.xlane.f32.xlu1 %v2641_v40 }
 0x91a   :  { %v2292_v25 = vpop.permute.xlu1 %2291 }
 0x91b   :  { %v2325_v4 = vmul.f32 %v2292_v25, %v4930_v42  ;;  %v2287_v6 = vpop.permute.xlu0 %2286  ;;  %v2786_v25 = vld [vmem:[%s5140_s17 + $0x28] sm:$0xff] }
 0x91c   :  { %v2324_v23 = vmul.f32 %v2287_v6, %v4933_v44 }
 0x91e   :  { %v4002_v14 = vpack.c.bf16 %v2325_v4, %v2324_v23 }
 0x91f   :  { %v2297_v11 = vpop.permute.xlu1 %2296  ;;  %v2302_v17 = vpop.permute.xlu0 %2301 }
 0x920   :  { %v2326_v30 = vmul.f32 %v2297_v11, %v4941_v51  ;;  %v2327_v26 = vmul.f32 %v2302_v17, %v4938_v50  ;;  %4003 = vmatpush3.bf16.msra.mxu0 %v4002_v14 }
 0x921   :  { %4004 = vmatprep.subr.bf16.mxu0 %v4197_v15 }
 0x922   :  { %v4005_v27 = vpack.c.bf16 %v2327_v26, %v2326_v30 }
 0x923   :  { %v2307_v28 = vpop.permute.xlu1 %2306  ;;  %v2312_v3 = vpop.permute.xlu0 %2311 }
 0x924   :  { %v2328_v47 = vmul.f32 %v2307_v28, %v4950_v60  ;;  %v2329_v42 = vmul.f32 %v2312_v3, %v4947_v8  ;;  %4006 = vmatpush3.bf16.msra.mxu0 %v4005_v27 }
 0x925   :  { %4007 = vmatprep.subr.bf16.mxu0 %v4197_v15 }
 0x926   :  { %v4008_v44 = vpack.c.bf16 %v2329_v42, %v2328_v47 }
 0x927   :  { %v2322_v59 = vpop.permute.xlu0 %2321 }
 0x928   :  { %v2331_v7 = vmul.f32 %v2322_v59, %v4956_v37  ;;  %4009 = vmatpush3.bf16.msra.mxu0 %v4008_v44  ;;  %v2680_v37 = vld [vmem:[%s5138_s15] sm:$0xff] }
 0x929   :  { %v2317_v51 = vpop.permute.xlu1 %2316  ;;  %4010 = vmatprep.subr.bf16.mxu0 %v4197_v15 }
 0x92a   :  { %v2330_v50 = vmul.f32 %v2317_v51, %v4959_v24  ;;  %v2681_v24 = vld [vmem:[%s5138_s15 + $0x8] sm:$0xff] }
 0x92b   :  { %v4050_v32 = vpack.c.bf16 %v2681_v24, %v2680_v37 }
 0x92c   :  { %v4011_v34 = vpack.c.bf16 %v2331_v7, %v2330_v50 }
 0x92e   :  { %4012 = vmatpush3.bf16.msra.mxu0 %v4011_v34 }
 0x92f   :  { %4025 = vmatprep.subr.bf16.mxu0 %v4197_v15 }
 0x931   :  { %3756 = vmatmul.mubr.msk.f32.vlgmr.msra.gmra.mrb[52].mxu0 %vm111_vm0, %v4967_v29 }
 0x932   :  { %4027 = vmatpush3.bf16.msra.mxu0 %v4026_v53  ;;  %3793 = vmatprep.mubr.msk.f32.mxu0 %vm4199_vm2, %v4200_v22  ;;  %v2782_v53 = vld [vmem:[%s5140_s17 + $0x8] sm:$0xff] }
 0x933   :  { %4028 = vmatprep.subr.bf16.mxu0 %v4197_v15 }
 0x936   :  { %4030 = vmatpush3.bf16.msra.mxu0 %v4029_v63  ;;  %v4056_v63 = vpack.c.bf16 %v2782_v53, %v2781_v19 }
 0x937   :  { %4031 = vmatprep.subr.bf16.mxu0 %v4197_v15 }
 0x93a   :  { %4033 = vmatpush3.bf16.msra.mxu0 %v4032_v62 }
 0x93b   :  { %4034 = vmatprep.subr.bf16.mxu0 %v4197_v15 }
 0x93e   :  { %4036 = vmatpush3.bf16.msra.mxu0 %v4035_v13  ;;  %v2785_v13 = vld [vmem:[%s5140_s17 + $0x20] sm:$0xff] }
 0x93f   :  { %4049 = vmatprep.subr.bf16.mxu0 %v4197_v15  ;;  %v4062_v23 = vpack.c.bf16 %v2786_v25, %v2785_v13 }
 0x941   :  { %3794 = vmatmul.mubr.msk.f32.vlgmr.msra.gmra.mrb[54].mxu0 %vm111_vm0, %v4967_v29 }
 0x942   :  { %3823 = vmatprep.mubr.msk.f32.mxu0 %vm4199_vm2, %v4200_v22  ;;  %4051 = vmatpush3.bf16.msra.mxu0 %v4050_v32  ;;  %v2787_v32 = vld [vmem:[%s5140_s17 + $0x30] sm:$0xff] }
 0x943   :  { %4052 = vmatprep.subr.bf16.mxu0 %v4197_v15  ;;  %v4065_v33 = vpack.c.bf16 %v2788_v31, %v2787_v32 }
 0x946   :  { %4054 = vmatpush3.bf16.msra.mxu0 %v4053_v43 }
 0x947   :  { %4055 = vmatprep.subr.bf16.mxu0 %v4197_v15 }
 0x958   :  { %v2471_v8 = vpop.f32.mrb[68].mxu1 }
 0x959   :  { %v3776_v60 = vpop.f32.mrb[69].mxu1 }
 0x95b   :  { %v2643_v14 = vpop.xlane.xlu1 %2642 }
 0x982   :  { %v2636_v52 = vpop.f32.mrb[70].mxu1 }
 0x983   :  { %v3814_v49 = vpop.f32.mrb[71].mxu1 }
 0xa04   :  { %v2401_v9 = vpop.f32.mrb[52].mxu0 }
 0xa05   :  { %v2475_v16 = vsub.f32 %v2471_v8, %v2401_v9  ;;  %v3757_v18 = vpop.f32.mrb[53].mxu0  ;;  %2891 = vst.msk [vmem:[#allocation3] sm:$0xf] %vm2890_vm3, %v2401_v9  ;;  %v2650_v2 = vrot.slane %v2401_v9, %v2649_v57  ;;  %v2654_v39 = vrot.slane %v2401_v9, %v2653_v35  ;;  %v2658_v41 = vrot.slane %v2401_v9, %v2657_v38  ;;  %v3147_v38 = vld [vmem:[%s5139_s16] ss:$0 sm:$0xff]  ;;  %s4202_s16 = smov [#allocation3]  }
 0xa06   :  { %v2662_v1 = vrot.slane %v2401_v9, %v2661_v10  ;;  %s2929_s17 = sshll.u32 %s4202_s16, 4  ;;  %s2930_s17 = int_to_ptr.vmem [resolvable:$true] %s2929_s17 }
 0xa07   :  { %v2667_v5 = vrot.slane %v2475_v16, 4  ;;  %v2664_v46 = vsel %vm2663_vm4, %v2650_v2, %v2654_v39  ;;  %s4147_s7 = scalar_lea.vmem %s2930_s17, 64  ;;  %p4152_p1 = scmp.lt.s32.totalorder %s2930_s17, %s2930_s17 }
 0xa08   :  { %v2665_v48 = vsel %vm2663_vm4, %v2658_v41, %v2662_v1  ;;  %p4148_p0 = scmp.ne.s32.totalorder %s2930_s17, %s4147_s7  ;;  %p4153_p2 = scmp.lt.s32.totalorder %s4147_s7, %s4147_s7 }
 0xa09   :  { %v2669_v29 = vsel %vm2663_vm4, %v2475_v16, %v2667_v5 }
 0xa0a   :  { %v2670_v45 = vmul.f32 0.5, %v2669_v29  ;;  %p4154_p3 = por %p4153_p2, %p4152_p1 }
 0xa0c   :  { %v2671_v20 = vadd.f32 %v2670_v45, %v2664_v46  ;;  %v2672_v54 = vadd.f32 %v2670_v45, %v2665_v48  ;;  %p4155_p4 = pnand %p4154_p3, %p4148_p0 }
 0xa0e   :  { %v2675_v55 = vrot.slane %v2671_v20, 4  ;;  %v2676_v56 = vrot.slane %v2672_v54, 4 }
 0xa10   :  { %v2679_v62 = vsel %vm2663_vm4, %v2401_v9, %v2675_v55  ;;  %v2677_v36 = vsel %vm2663_vm4, %v2675_v55, %v2676_v56 }
 0xa11   :  { %3824 = vmatmul.mubr.msk.f32.vlgmr.msra.gmra.mrb[56].mxu0 %vm217_vm1, %v2679_v62 }
 0xa12   :  { %3826 = vmatprep.mubr.msk.f32.mxu0 %vm4199_vm2, %v4200_v22  ;;  %4057 = vmatpush3.bf16.msra.mxu0 %v4056_v63 }
 0xa13   :  { %4058 = vmatprep.subr.bf16.mxu0 %v4197_v15 }
 0xa14   :  { %v2542_v4 = vpop.f32.mrb[54].mxu0 }
 0xa15   :  { %3827 = vmatmul.mubr.msk.f32.gmra.mrb[58].mxu0 %vm217_vm1, %v2677_v36  ;;  %v3795_v6 = vpop.f32.mrb[55].mxu0  ;;  %v2645_v11 = vsub.f32 %v2643_v14, %v2542_v4  ;;  %v2644_v17 = vadd.f32 1e-08, %v2542_v4 }
 0xa16   :  { %3829 = vmatprep.mubr.msk.f32.mxu0 %vm4199_vm2, %v4200_v22  ;;  %4060 = vmatpush3.bf16.msra.mxu0 %v4059_v0 }
 0xa17   :  { %4061 = vmatprep.subr.bf16.mxu0 %v4197_v15  ;;  %v2646_v30 = vadd.f32 1e-08, %v2645_v11 }
 0xa19   :  { %3830 = vmatmul.mubr.msk.f32.gmra.mrb[60].mxu0 %vm217_vm1, %v2676_v56  ;;  %v2892_v26 = vadd.f32 %v2646_v30, %v2644_v17  ;;  %vm2897_vm1 = vcmask 3072  }
 0xa1a   :  { %4063 = vmatpush3.bf16.msra.mxu0 %v4062_v23  ;;  %3848 = vmatprep.mubr.msk.f32.mxu0 %vm4199_vm2, %v4200_v22 }
 0xa1b   :  { %4064 = vmatprep.subr.bf16.mxu0 %v4197_v15  ;;  %4142 = vrcp.f32 %v2892_v26 }
 0xa1c   :  { %4144 = vrcp.f32 %v2643_v14 }
 0xa1e   :  { %4066 = vmatpush3.bf16.msra.mxu0 %v4065_v33 }
 0xa25   :  { %v4143_v27 = vpop.eup %4142 }
 0xa26   :  { %v4145_v28 = vpop.eup %4144  ;;  %v2894_v3 = vmul.f32 %v4143_v27, %v2644_v17 }
 0xa27   :  { %v2908_v47 = vmul.f32 %v4145_v28, %v2636_v52 }
 0xa28   :  { %v3155_v42 = vadd.f32 -0.4, %v2894_v3 }
 0xa29   :  { %v3156_v44 = vadd.f32 -0.4, %v2908_v47 }
 0xa2a   :  { %v2896_v59 = vand.u32 2147483647, %v3155_v42 }
 0xa2b   :  { %v2910_v7 = vsel %vm2897_vm1, %v3156_v44, 0.0 }
 0xa2c   :  { %v2898_v51 = vsel %vm2897_vm1, %v2896_v59, 0.0  ;;  %v2911_v50 = vrot.slane %v2910_v7, 4 }
 0xa2d   :  { %v2899_v34 = vrot.slane %v2898_v51, 4 }
 0xa2e   :  { %v2912_v15 = vadd.f32 %v2911_v50, %v2910_v7 }
 0xa2f   :  { %v2900_v8 = vadd.f32 %v2899_v34, %v2898_v51 }
 0xa30   :  { %v2913_v60 = vrot.slane %v2912_v15, 2 }
 0xa31   :  { %v2901_v37 = vrot.slane %v2900_v8, 2 }
 0xa32   :  { %v2914_v24 = vadd.f32 %v2913_v60, %v2912_v15 }
 0xa33   :  { %v2902_v43 = vadd.f32 %v2901_v37, %v2900_v8 }
 0xa34   :  { %v2915_v40 = vrot.slane %v2914_v24, 1 }
 0xa35   :  { %v2903_v52 = vrot.slane %v2902_v43, 1 }
 0xa36   :  { %v2916_v21 = vadd.f32 %v2915_v40, %v2914_v24 }
 0xa37   :  { %v2904_v49 = vadd.f32 %v2903_v52, %v2902_v43 }
 0xa38   :  { %v2917_v57 = vmul.f32 0.25, %v2916_v21 }
 0xa39   :  { %v2906_v58 = vmul.f32 0.25, %v2904_v49 }
 0xa3b   :  { %v2918_v35 = vadd.f32 %v2917_v57, %v2906_v58 }
 0xa3d   :  { %2920 = vst.msk [vmem:[#allocation5] sm:$0x1] %vm2919_vm5, %v2918_v35 }
 0xae4   :  { %v2764_v10 = vpop.f32.mrb[56].mxu0 }
 0xae5   :  { %v2765_v9 = vadd.f32 %v3147_v38, %v2764_v10  ;;  %v3825_v16 = vpop.f32.mrb[57].mxu0 }
 0xae7   :  { %v2778_v18 = vmax.f32 %v2765_v9, 0.0 }
 0xae8   :  { %v2769_v2 = vpop.f32.mrb[58].mxu0 }
 0xae9   :  { %v2770_v39 = vadd.f32 %v3147_v38, %v2769_v2  ;;  %v3828_v41 = vpop.f32.mrb[59].mxu0  ;;  %3849 = vmatmul.mubr.msk.f32.vlgmr.msra.gmra.mrb[62].mxu0 %vm111_vm0, %v2778_v18 }
 0xaea   :  { %3851 = vmatprep.mubr.msk.f32.mxu0 %vm4199_vm2, %v4200_v22 }
 0xaeb   :  { %v2779_v1 = vmax.f32 %v2770_v39, 0.0 }
 0xaec   :  { %v2774_v5 = vpop.f32.mrb[60].mxu0 }
 0xaed   :  { %v2775_v29 = vadd.f32 %v3147_v38, %v2774_v5  ;;  %v3831_v45 = vpop.f32.mrb[61].mxu0  ;;  %3852 = vmatmul.mubr.msk.f32.gmra.mrb[64].mxu0 %vm111_vm0, %v2779_v1 }
 0xaee   :  { %3854 = vmatprep.mubr.msk.f32.mxu0 %vm4199_vm2, %v4200_v22 }
 0xaef   :  { %v2780_v46 = vmax.f32 %v2775_v29, 0.0 }
 0xaf1   :  { %3855 = vmatmul.mubr.msk.f32.gmra.mrb[66].mxu0 %vm111_vm0, %v2780_v46 }
 0xaf2   :  { %4158 = shalt.err (!%p4155_p4)
}
 0xaf3   :  { %s4159_s24 = scalar_lea.hbm %s5143_s20, 64 }
 0xaf4   :  { %p4160_p5 = scmp.ne.s32.totalorder %s5143_s20, %s4159_s24  ;;  %p4163_p6 = scmp.lt.u32.totalorder %s4159_s24, %s5143_s20 }
 0xaf6   :  { %p4165_p7 = pnand %p4163_p6, %p4160_p5 }
 0xaf8   :  { %4168 = shalt.err (!%p4165_p7)
}
 0xaf9   :  { %2932 = dma.vmem_to_hbm [thread:$0]  %s2930_s17, 64, %s5143_s20, [#allocation4]  }
 0xafa   :  { %s4169_s28 = scalar_lea.vmem %s2940_s23, 16  ;;  %s4173_s9 = scalar_lea.vmem %s2940_s23, 32 }
 0xafb   :  { %p4170_p8 = scmp.ne.s32.totalorder %s2940_s23, %s4169_s28  ;;  %p4174_p9 = scmp.lt.s32.totalorder %s2940_s23, %s2940_s23 }
 0xafc   :  { %p4175_p10 = scmp.lt.s32.totalorder %s4173_s9, %s4169_s28 }
 0xafe   :  { %p4176_p11 = por %p4175_p10, %p4174_p9 }
 0xb00   :  { %p4177_p12 = pnand %p4176_p11, %p4170_p8 }
 0xb02   :  { %4180 = shalt.err (!%p4177_p12)
}
 0xb03   :  { %s4181_s10 = scalar_lea.hbm %s5144_s21, 16 }
 0xb04   :  { %p4182_p13 = scmp.ne.s32.totalorder %s5144_s21, %s4181_s10  ;;  %p4185_p0 = scmp.lt.u32.totalorder %s4181_s10, %s5144_s21 }
 0xb06   :  { %p4187_p1 = pnand %p4185_p0, %p4182_p13 }
 0xb08   :  { %4190 = shalt.err (!%p4187_p1)
}
 0xb09   :  { %2942 = dma.vmem_to_hbm [thread:$0]  %s2940_s23, 16, %s5144_s21, [#allocation6]   ;;  %v3151_v22 = vld [vmem:[%s5141_s18] ss:$0 sm:$0xff]  ;;  %vm2885_vm0 = vcmask 23552   ;;  %vm2888_vm2 = vcmask 19456  }
 0xbbc   :  { %v2871_v48 = vpop.f32.mrb[62].mxu0 }
 0xbbd   :  { %v2872_v19 = vadd.f32 %v3151_v22, %v2871_v48  ;;  %v3850_v53 = vpop.f32.mrb[63].mxu0 }
 0xbbf   :  { %2886 = vst.msk [vmem:[%s5142_s19] sm:$0xff] %vm2885_vm0, %v2872_v19 }
 0xbc0   :  { %v2876_v20 = vpop.f32.mrb[64].mxu0 }
 0xbc1   :  { %v2877_v54 = vadd.f32 %v3151_v22, %v2876_v20  ;;  %v3853_v55 = vpop.f32.mrb[65].mxu0 }
 0xbc3   :  { %2887 = vst.msk [vmem:[%s5142_s19 + $0x8] sm:$0xff] %vm2885_vm0, %v2877_v54 }
 0xbc4   :  { %v2881_v56 = vpop.f32.mrb[66].mxu0 }
 0xbc5   :  { %v2882_v63 = vadd.f32 %v3151_v22, %v2881_v56  ;;  %v3856_v12 = vpop.f32.mrb[67].mxu0 }
 0xbc7   :  { %2889 = vst.msk [vmem:[%s5142_s19 + $0x10] sm:$0xf] %vm2888_vm2, %v2882_v63 }
 0xbc8   :  { %4191 = dma.done.wait [#allocation4], 64  }
 0xbc9   :  { %4192 = vsyncadd [#allocation4], 4294967232 }
 0xbca   :  { %4193 = dma.done.wait [#allocation6], 16  }
 0xbcb   :  { %4194 = vsyncadd [#allocation6], 4294967280 }
 0xbcc   :  { %2951 = vsyncpa [#allocation4], 1 }
 0xbcd   :  { %2952 = vsyncpa [#allocation6], 1 }

</bundles_post_ra>
